<compile_context>
chip_gen: v6e
topology: v6e:2x2x1
jax: 0.10.0
libtpu: 0.0.40
codegen_flags: <defaults>
</compile_context>

<pallas_src>
import functools

import jax
import jax.numpy as jnp
from jax import lax
from jax.experimental import pallas as pl
from jax.experimental.pallas import tpu as pltpu

_VMEM = pl.BlockSpec(memory_space=pltpu.MemorySpace.VMEM)
_BN_EPS = 1e-5


def _sigmoid(y):
    # numerically-stable sigmoid on the EUP (tanh) slot — no inf intermediate.
    return 0.5 * (jnp.tanh(0.5 * y) + 1.0)


# --------------------------------------------------------------------------
# Pallas kernels
# --------------------------------------------------------------------------
def _conv_gemm_kernel(w_ref, x_ref, b_ref, o_ref, *, act):
    """(Cout,K) @ (K,M) + bias(Cout,1), optional activation. Lane dim = M."""
    y = jnp.dot(w_ref[...], x_ref[...], preferred_element_type=jnp.float32)
    y = y + b_ref[...]
    if act == "relu":
        y = jnp.maximum(y, 0.0)
    elif act == "sigmoid":
        y = _sigmoid(y)
    o_ref[...] = y


def _conv_gemm_bn_relu_kernel(w_ref, x_ref, b_ref, g_ref, bt_ref, o_ref):
    """conv GEMM + training-mode BatchNorm (stats over lanes = B*OH*OW) + ReLU."""
    y = jnp.dot(w_ref[...], x_ref[...], preferred_element_type=jnp.float32)
    y = y + b_ref[...]
    mean = jnp.mean(y, axis=1, keepdims=True)
    var = jnp.mean((y - mean) ** 2, axis=1, keepdims=True)
    y = (y - mean) * lax.rsqrt(var + _BN_EPS) * g_ref[...] + bt_ref[...]
    o_ref[...] = jnp.maximum(y, 0.0)


def conv_gemm(wt, xt, bias, gamma=None, beta=None, act=None):
    """Transposed conv GEMM with fused bias / BatchNorm / activation epilogue.

    wt: (Cout, K) weights, xt: (K, M=B*OH*OW) im2col patches.
    MXU operands in bf16, epilogue math in f32, output f32 (Cout, M)."""
    cout, k = wt.shape
    k2, m = xt.shape
    assert k == k2
    wt_b = wt.astype(jnp.bfloat16)
    xt_b = xt.astype(jnp.bfloat16)
    b2 = bias.reshape(cout, 1).astype(jnp.float32)
    if gamma is None:
        return pl.pallas_call(
            functools.partial(_conv_gemm_kernel, act=act),
            out_shape=jax.ShapeDtypeStruct((cout, m), jnp.float32),
            in_specs=[_VMEM, _VMEM, _VMEM],
            out_specs=_VMEM,
        )(wt_b, xt_b, b2)
    return pl.pallas_call(
        _conv_gemm_bn_relu_kernel,
        out_shape=jax.ShapeDtypeStruct((cout, m), jnp.float32),
        in_specs=[_VMEM] * 5,
        out_specs=_VMEM,
    )(wt_b, xt_b, b2,
      gamma.reshape(cout, 1).astype(jnp.float32),
      beta.reshape(cout, 1).astype(jnp.float32))


def _dense_chain_kernel(hf_ref, eps_ref, w1, b1, w2, b2, w3, b3,
                        dw1, db1, dw2, db2, o_ref):
    """Encoder linear head + reparameterization + decoder linear stack, fused."""
    f32 = jnp.float32
    h = jnp.dot(hf_ref[...], w1[...], preferred_element_type=f32) + b1[...]
    h = jnp.maximum(h, 0.0)                                         # linear1+ReLU
    mu = jnp.dot(h, w2[...], preferred_element_type=f32) + b2[...]  # linear2
    log_sigma = jnp.dot(h, w3[...], preferred_element_type=f32) + b3[...]  # linear3
    z = mu + jnp.exp(log_sigma) * eps_ref[...]                      # reparameterize (exp on EUP)
    # TODO(synk): encoder.kl is a stored side-effect on the torch module, not part
    # of forward's return value; it is intentionally not materialized here.
    d = jnp.dot(z, dw1[...], preferred_element_type=f32) + db1[...]
    d = jnp.maximum(d, 0.0)                                         # decoder lin1+ReLU
    d = jnp.dot(d, dw2[...], preferred_element_type=f32) + db2[...]
    o_ref[...] = jnp.maximum(d, 0.0)                                # decoder lin2+ReLU


def dense_chain(hf, eps, p):
    B = hf.shape[0]
    n_out = p["dlin2_w"].shape[1]
    args = (hf.astype(jnp.float32), eps.astype(jnp.float32),
            p["lin1_w"], p["lin1_b"].reshape(1, -1),
            p["lin2_w"], p["lin2_b"].reshape(1, -1),
            p["lin3_w"], p["lin3_b"].reshape(1, -1),
            p["dlin1_w"], p["dlin1_b"].reshape(1, -1),
            p["dlin2_w"], p["dlin2_b"].reshape(1, -1))
    return pl.pallas_call(
        _dense_chain_kernel,
        out_shape=jax.ShapeDtypeStruct((B, n_out), jnp.float32),
        in_specs=[_VMEM] * len(args),
        out_specs=_VMEM,
    )(*args)


# --------------------------------------------------------------------------
# XLA glue: im2col / dilation / layout plumbing (tiny, static shapes)
# --------------------------------------------------------------------------
def _im2col_T(x_nhwc, kh, kw, stride):
    """im2col patches, returned transposed: (kh*kw*C, B*oh*ow) — lane-dense M."""
    B, H, W, C = x_nhwc.shape
    oh = (H - kh) // stride + 1
    ow = (W - kw) // stride + 1
    cols = []
    for i in range(kh):
        for j in range(kw):
            cols.append(
                x_nhwc[:, i:i + stride * (oh - 1) + 1:stride,
                       j:j + stride * (ow - 1) + 1:stride, :])
    patches = jnp.concatenate(cols, axis=-1)   # (B,oh,ow,kh*kw*C), (i,j)-major, c-minor
    return patches.reshape(B * oh * ow, kh * kw * C).T, (B, oh, ow)


def conv2d(x_nhwc, w_oihw, b, stride, pad, act=None, gamma=None, beta=None):
    cout, cin, kh, kw = w_oihw.shape
    xp = jnp.pad(x_nhwc, ((0, 0), (pad, pad), (pad, pad), (0, 0)))
    xt, (B, oh, ow) = _im2col_T(xp, kh, kw, stride)
    wt = jnp.transpose(w_oihw, (0, 2, 3, 1)).reshape(cout, kh * kw * cin)  # (Cout, K)
    y = conv_gemm(wt, xt, b, gamma=gamma, beta=beta, act=act)              # (Cout, B*oh*ow)
    return jnp.transpose(y.reshape(cout, B, oh, ow), (1, 2, 3, 0))         # NHWC


def conv_transpose2d(x_nhwc, w_iohw, b, stride, pad, out_pad,
                     act=None, gamma=None, beta=None):
    cin, cout, kh, kw = w_iohw.shape
    B, H, W, C = x_nhwc.shape
    assert C == cin
    # zero-dilate by stride, pad by (k-1-pad) (+output_padding bottom/right),
    # then a stride-1 conv with a spatially-flipped, channel-swapped kernel.
    # Kept as XLA glue — the dilated buffers are tiny at this size.
    dh, dw = (H - 1) * stride + 1, (W - 1) * stride + 1
    xd = jnp.zeros((B, dh, dw, C), x_nhwc.dtype).at[:, ::stride, ::stride, :].set(x_nhwc)
    ph, pw = kh - 1 - pad, kw - 1 - pad
    xp = jnp.pad(xd, ((0, 0), (ph, ph + out_pad), (pw, pw + out_pad), (0, 0)))
    xt, (_, oh, ow) = _im2col_T(xp, kh, kw, 1)
    w_eq = jnp.transpose(w_iohw[:, :, ::-1, ::-1], (1, 2, 3, 0)).reshape(cout, kh * kw * cin)
    y = conv_gemm(w_eq, xt, b, gamma=gamma, beta=beta, act=act)
    return jnp.transpose(y.reshape(cout, B, oh, ow), (1, 2, 3, 0))


# --------------------------------------------------------------------------
# Parameters (deterministic synthetic init; PyTorch tensor layouts)
# --------------------------------------------------------------------------
def init_params(key, latent_dims):
    ks = jax.random.split(key, 24)

    def w(k, shape, scale=0.1):
        return scale * jax.random.normal(k, shape, jnp.float32)

    p = {}
    # ---- encoder ----
    p["conv1_w"] = w(ks[0], (8, 1, 3, 3));    p["conv1_b"] = w(ks[1], (8,), 0.01)
    p["conv2_w"] = w(ks[2], (16, 8, 3, 3));   p["conv2_b"] = w(ks[3], (16,), 0.01)
    p["bn2_g"] = jnp.ones((16,), jnp.float32); p["bn2_b"] = jnp.zeros((16,), jnp.float32)
    p["conv3_w"] = w(ks[4], (32, 16, 3, 3));  p["conv3_b"] = w(ks[5], (32,), 0.01)
    p["lin1_w"] = w(ks[6], (288, 128), 0.05); p["lin1_b"] = w(ks[7], (128,), 0.01)
    p["lin2_w"] = w(ks[8], (128, latent_dims), 0.05); p["lin2_b"] = w(ks[9], (latent_dims,), 0.01)
    p["lin3_w"] = w(ks[10], (128, latent_dims), 0.05); p["lin3_b"] = w(ks[11], (latent_dims,), 0.01)
    # ---- decoder ----
    p["dlin1_w"] = w(ks[12], (latent_dims, 128), 0.05); p["dlin1_b"] = w(ks[13], (128,), 0.01)
    p["dlin2_w"] = w(ks[14], (128, 288), 0.05);         p["dlin2_b"] = w(ks[15], (288,), 0.01)
    # ConvTranspose2d weights are (Cin, Cout, KH, KW)
    p["dconv1_w"] = w(ks[16], (32, 16, 3, 3)); p["dconv1_b"] = w(ks[17], (16,), 0.01)
    p["dbn1_g"] = jnp.ones((16,), jnp.float32); p["dbn1_b"] = jnp.zeros((16,), jnp.float32)
    p["dconv2_w"] = w(ks[18], (16, 8, 3, 3));  p["dconv2_b"] = w(ks[19], (8,), 0.01)
    p["dbn2_g"] = jnp.ones((8,), jnp.float32); p["dbn2_b"] = jnp.zeros((8,), jnp.float32)
    p["dconv3_w"] = w(ks[20], (8, 1, 3, 3));   p["dconv3_b"] = w(ks[21], (1,), 0.01)
    return p


# --------------------------------------------------------------------------
# VAE forward (== VariationalAutoencoder.forward) — 7 fused Pallas calls total
# --------------------------------------------------------------------------
def vae_forward(params, x_nchw, eps):
    x = jnp.transpose(x_nchw, (0, 2, 3, 1)).astype(jnp.float32)  # NCHW -> NHWC

    # ---------------- encoder ----------------
    h = conv2d(x, params["conv1_w"], params["conv1_b"], stride=2, pad=1,
               act="relu")                                                        # (B,14,14,8)
    h = conv2d(h, params["conv2_w"], params["conv2_b"], stride=2, pad=1,
               gamma=params["bn2_g"], beta=params["bn2_b"])   # conv+BN+ReLU fused  (B,7,7,16)
    h = conv2d(h, params["conv3_w"], params["conv3_b"], stride=2, pad=0,
               act="relu")                                                        # (B,3,3,32)

    # torch.flatten(start_dim=1) follows NCHW ordering -> transpose back first
    hf = jnp.transpose(h, (0, 3, 1, 2)).reshape(h.shape[0], -1)                   # (B,288)

    # linear1+ReLU, linear2, linear3, exp/reparam, decoder lin1/2+ReLU: ONE call
    d = dense_chain(hf, eps, params)                                              # (B,288)

    # nn.Unflatten -> NCHW (B,32,3,3) -> NHWC
    d = jnp.transpose(d.reshape(d.shape[0], 32, 3, 3), (0, 2, 3, 1))              # (B,3,3,32)

    # ---------------- decoder convs ----------------
    d = conv_transpose2d(d, params["dconv1_w"], params["dconv1_b"], stride=2, pad=0,
                         out_pad=0, gamma=params["dbn1_g"], beta=params["dbn1_b"])  # (B,7,7,16)
    d = conv_transpose2d(d, params["dconv2_w"], params["dconv2_b"], stride=2, pad=1,
                         out_pad=1, gamma=params["dbn2_g"], beta=params["dbn2_b"])  # (B,14,14,8)
    d = conv_transpose2d(d, params["dconv3_w"], params["dconv3_b"], stride=2, pad=1,
                         out_pad=1, act="sigmoid")                                  # (B,28,28,1)

    return jnp.transpose(d, (0, 3, 1, 2))                        # back to NCHW (B,1,28,28)


# --------------------------------------------------------------------------
if __name__ == "__main__":
    latent_dims = 4
    batch = 2

    key = jax.random.PRNGKey(0)
    kx, keps, kp = jax.random.split(key, 3)

    params = init_params(kp, latent_dims)
    # 28x28 input is dictated by the architecture (conv stack -> 3*3*32 flatten)
    x = jax.random.uniform(kx, (batch, 1, 28, 28), jnp.float32)
    # eps stands in for torch.distributions.Normal(0,1).sample(mu.shape)
    eps = jax.random.normal(keps, (batch, latent_dims), jnp.float32)

    out = jax.jit(vae_forward)(params, x, eps)
    out = jax.block_until_ready(out)

    assert out.shape == (batch, 1, 28, 28), out.shape
    assert out.dtype == jnp.float32
    assert bool(jnp.all(jnp.isfinite(out)))
    assert bool(jnp.all((out >= 0.0) & (out <= 1.0)))  # sigmoid output range
    print("KERNEL_OK")
</pallas_src>

<mosaic_0001>
module attributes {stable_mosaic.version = 11 : i64} {
  func.func @_conv_gemm_kernel(%arg0: memref<8x9xbf16, #tpu.memory_space<vmem>>, %arg1: memref<9x392xbf16, #tpu.memory_space<vmem>>, %arg2: memref<8x1xf32, #tpu.memory_space<vmem>>, %arg3: memref<8x392xf32, #tpu.memory_space<vmem>>) attributes {dimension_semantics = [], scalar_prefetch = 0 : i64, scratch_operands = 0 : i64, tpu.core_type = #tpu.core_type<tc>} {
    %c0 = arith.constant 0 : index
    %c0_0 = arith.constant 0 : index
    %0 = vector.load %arg0[%c0, %c0_0] : memref<8x9xbf16, #tpu.memory_space<vmem>>, vector<8x9xbf16>
    %c0_1 = arith.constant 0 : index
    %c0_2 = arith.constant 0 : index
    %1 = vector.load %arg1[%c0_1, %c0_2] : memref<9x392xbf16, #tpu.memory_space<vmem>>, vector<9x392xbf16>
    %cst = arith.constant dense<0.000000e+00> : vector<8x392xf32>
    %2 = tpu.matmul %0, %1, %cst {dimension_numbers = #tpu.dot_dimension_numbers<[1], [0], [0], [1], [0, 0, 1, 1], [], []>} : vector<8x9xbf16>, vector<9x392xbf16>, vector<8x392xf32> -> vector<8x392xf32>
    %c0_3 = arith.constant 0 : index
    %c0_4 = arith.constant 0 : index
    %3 = vector.load %arg2[%c0_3, %c0_4] : memref<8x1xf32, #tpu.memory_space<vmem>>, vector<8x1xf32>
    %4 = vector.broadcast %3 : vector<8x1xf32> to vector<8x392xf32>
    %5 = arith.addf %2, %4 : vector<8x392xf32>
    %cst_5 = arith.constant 0.000000e+00 : f32
    %6 = vector.broadcast %cst_5 : f32 to vector<8x392xf32>
    %7 = arith.maximumf %5, %6 : vector<8x392xf32>
    %c0_6 = arith.constant 0 : index
    %c0_7 = arith.constant 0 : index
    %8 = vector.load %arg3[%c0_6, %c0_7] : memref<8x392xf32, #tpu.memory_space<vmem>>, vector<8x392xf32>
    tpu.vector_store %arg3[%c0_6, %c0_7], %7 {strides = array<i32>} : memref<8x392xf32, #tpu.memory_space<vmem>>, vector<8x392xf32>,
    return
  }
}

module attributes {stable_mosaic.version = 11 : i64} {
  func.func @_conv_gemm_bn_relu_kernel(%arg0: memref<16x72xbf16, #tpu.memory_space<vmem>>, %arg1: memref<72x98xbf16, #tpu.memory_space<vmem>>, %arg2: memref<16x1xf32, #tpu.memory_space<vmem>>, %arg3: memref<16x1xf32, #tpu.memory_space<vmem>>, %arg4: memref<16x1xf32, #tpu.memory_space<vmem>>, %arg5: memref<16x98xf32, #tpu.memory_space<vmem>>) attributes {dimension_semantics = [], scalar_prefetch = 0 : i64, scratch_operands = 0 : i64, tpu.core_type = #tpu.core_type<tc>} {
    %c0 = arith.constant 0 : index
    %c0_0 = arith.constant 0 : index
    %0 = vector.load %arg0[%c0, %c0_0] : memref<16x72xbf16, #tpu.memory_space<vmem>>, vector<16x72xbf16>
    %c0_1 = arith.constant 0 : index
    %c0_2 = arith.constant 0 : index
    %1 = vector.load %arg1[%c0_1, %c0_2] : memref<72x98xbf16, #tpu.memory_space<vmem>>, vector<72x98xbf16>
    %cst = arith.constant dense<0.000000e+00> : vector<16x98xf32>
    %2 = tpu.matmul %0, %1, %cst {dimension_numbers = #tpu.dot_dimension_numbers<[1], [0], [0], [1], [0, 0, 1, 1], [], []>} : vector<16x72xbf16>, vector<72x98xbf16>, vector<16x98xf32> -> vector<16x98xf32>
    %c0_3 = arith.constant 0 : index
    %c0_4 = arith.constant 0 : index
    %3 = vector.load %arg2[%c0_3, %c0_4] : memref<16x1xf32, #tpu.memory_space<vmem>>, vector<16x1xf32>
    %4 = vector.broadcast %3 : vector<16x1xf32> to vector<16x98xf32>
    %5 = arith.addf %2, %4 : vector<16x98xf32>
    %cst_5 = arith.constant dense<0.000000e+00> : vector<16xf32>
    %6 = vector.multi_reduction <add>, %5, %cst_5 [1] : vector<16x98xf32> to vector<16xf32>
    %7 = vector.shape_cast %6 : vector<16xf32> to vector<16x1xf32>
    %cst_6 = arith.constant 9.800000e+01 : f32
    %8 = vector.broadcast %cst_6 : f32 to vector<16x1xf32>
    %9 = arith.divf %7, %8 : vector<16x1xf32>
    %10 = vector.broadcast %9 : vector<16x1xf32> to vector<16x98xf32>
    %11 = arith.subf %5, %10 : vector<16x98xf32>
    %12 = arith.mulf %11, %11 : vector<16x98xf32>
    %cst_7 = arith.constant dense<0.000000e+00> : vector<16xf32>
    %13 = vector.multi_reduction <add>, %12, %cst_7 [1] : vector<16x98xf32> to vector<16xf32>
    %14 = vector.shape_cast %13 : vector<16xf32> to vector<16x1xf32>
    %cst_8 = arith.constant 9.800000e+01 : f32
    %15 = vector.broadcast %cst_8 : f32 to vector<16x1xf32>
    %16 = arith.divf %14, %15 : vector<16x1xf32>
    %17 = vector.broadcast %9 : vector<16x1xf32> to vector<16x98xf32>
    %18 = arith.subf %5, %17 : vector<16x98xf32>
    %cst_9 = arith.constant 9.99999974E-6 : f32
    %19 = vector.broadcast %cst_9 : f32 to vector<16x1xf32>
    %20 = arith.addf %16, %19 : vector<16x1xf32>
    %21 = math.rsqrt %20 : vector<16x1xf32>
    %22 = vector.broadcast %21 : vector<16x1xf32> to vector<16x98xf32>
    %23 = arith.mulf %18, %22 : vector<16x98xf32>
    %c0_10 = arith.constant 0 : index
    %c0_11 = arith.constant 0 : index
    %24 = vector.load %arg3[%c0_10, %c0_11] : memref<16x1xf32, #tpu.memory_space<vmem>>, vector<16x1xf32>
    %25 = vector.broadcast %24 : vector<16x1xf32> to vector<16x98xf32>
    %26 = arith.mulf %23, %25 : vector<16x98xf32>
    %c0_12 = arith.constant 0 : index
    %c0_13 = arith.constant 0 : index
    %27 = vector.load %arg4[%c0_12, %c0_13] : memref<16x1xf32, #tpu.memory_space<vmem>>, vector<16x1xf32>
    %28 = vector.broadcast %27 : vector<16x1xf32> to vector<16x98xf32>
    %29 = arith.addf %26, %28 : vector<16x98xf32>
    %cst_14 = arith.constant 0.000000e+00 : f32
    %30 = vector.broadcast %cst_14 : f32 to vector<16x98xf32>
    %31 = arith.maximumf %29, %30 : vector<16x98xf32>
    %c0_15 = arith.constant 0 : index
    %c0_16 = arith.constant 0 : index
    %32 = vector.load %arg5[%c0_15, %c0_16] : memref<16x98xf32, #tpu.memory_space<vmem>>, vector<16x98xf32>
    tpu.vector_store %arg5[%c0_15, %c0_16], %31 {strides = array<i32>} : memref<16x98xf32, #tpu.memory_space<vmem>>, vector<16x98xf32>,
    return
  }
}

module attributes {stable_mosaic.version = 11 : i64} {
  func.func @_conv_gemm_kernel(%arg0: memref<32x144xbf16, #tpu.memory_space<vmem>>, %arg1: memref<144x18xbf16, #tpu.memory_space<vmem>>, %arg2: memref<32x1xf32, #tpu.memory_space<vmem>>, %arg3: memref<32x18xf32, #tpu.memory_space<vmem>>) attributes {dimension_semantics = [], scalar_prefetch = 0 : i64, scratch_operands = 0 : i64, tpu.core_type = #tpu.core_type<tc>} {
    %c0 = arith.constant 0 : index
    %c0_0 = arith.constant 0 : index
    %0 = vector.load %arg0[%c0, %c0_0] : memref<32x144xbf16, #tpu.memory_space<vmem>>, vector<32x144xbf16>
    %c0_1 = arith.constant 0 : index
    %c0_2 = arith.constant 0 : index
    %1 = vector.load %arg1[%c0_1, %c0_2] : memref<144x18xbf16, #tpu.memory_space<vmem>>, vector<144x18xbf16>
    %cst = arith.constant dense<0.000000e+00> : vector<32x18xf32>
    %2 = tpu.matmul %0, %1, %cst {dimension_numbers = #tpu.dot_dimension_numbers<[1], [0], [0], [1], [0, 0, 1, 1], [], []>} : vector<32x144xbf16>, vector<144x18xbf16>, vector<32x18xf32> -> vector<32x18xf32>
    %c0_3 = arith.constant 0 : index
    %c0_4 = arith.constant 0 : index
    %3 = vector.load %arg2[%c0_3, %c0_4] : memref<32x1xf32, #tpu.memory_space<vmem>>, vector<32x1xf32>
    %4 = vector.broadcast %3 : vector<32x1xf32> to vector<32x18xf32>
    %5 = arith.addf %2, %4 : vector<32x18xf32>
    %cst_5 = arith.constant 0.000000e+00 : f32
    %6 = vector.broadcast %cst_5 : f32 to vector<32x18xf32>
    %7 = arith.maximumf %5, %6 : vector<32x18xf32>
    %c0_6 = arith.constant 0 : index
    %c0_7 = arith.constant 0 : index
    %8 = vector.load %arg3[%c0_6, %c0_7] : memref<32x18xf32, #tpu.memory_space<vmem>>, vector<32x18xf32>
    tpu.vector_store %arg3[%c0_6, %c0_7], %7 {strides = array<i32>} : memref<32x18xf32, #tpu.memory_space<vmem>>, vector<32x18xf32>,
    return
  }
}

module attributes {stable_mosaic.version = 11 : i64} {
  func.func @_dense_chain_kernel(%arg0: memref<2x288xf32, #tpu.memory_space<vmem>>, %arg1: memref<2x4xf32, #tpu.memory_space<vmem>>, %arg2: memref<288x128xf32, #tpu.memory_space<vmem>>, %arg3: memref<1x128xf32, #tpu.memory_space<vmem>>, %arg4: memref<128x4xf32, #tpu.memory_space<vmem>>, %arg5: memref<1x4xf32, #tpu.memory_space<vmem>>, %arg6: memref<128x4xf32, #tpu.memory_space<vmem>>, %arg7: memref<1x4xf32, #tpu.memory_space<vmem>>, %arg8: memref<4x128xf32, #tpu.memory_space<vmem>>, %arg9: memref<1x128xf32, #tpu.memory_space<vmem>>, %arg10: memref<128x288xf32, #tpu.memory_space<vmem>>, %arg11: memref<1x288xf32, #tpu.memory_space<vmem>>, %arg12: memref<2x288xf32, #tpu.memory_space<vmem>>) attributes {dimension_semantics = [], scalar_prefetch = 0 : i64, scratch_operands = 0 : i64, tpu.core_type = #tpu.core_type<tc>} {
    %c0 = arith.constant 0 : index
    %c0_0 = arith.constant 0 : index
    %0 = vector.load %arg0[%c0, %c0_0] : memref<2x288xf32, #tpu.memory_space<vmem>>, vector<2x288xf32>
    %c0_1 = arith.constant 0 : index
    %c0_2 = arith.constant 0 : index
    %1 = vector.load %arg2[%c0_1, %c0_2] : memref<288x128xf32, #tpu.memory_space<vmem>>, vector<288x128xf32>
    %cst = arith.constant dense<0.000000e+00> : vector<2x128xf32>
    %2 = tpu.matmul %0, %1, %cst {dimension_numbers = #tpu.dot_dimension_numbers<[1], [0], [0], [1], [0, 0, 1, 1], [], []>} : vector<2x288xf32>, vector<288x128xf32>, vector<2x128xf32> -> vector<2x128xf32>
    %c0_3 = arith.constant 0 : index
    %c0_4 = arith.constant 0 : index
    %3 = vector.load %arg3[%c0_3, %c0_4] : memref<1x128xf32, #tpu.memory_space<vmem>>, vector<1x128xf32>
    %4 = vector.broadcast %3 : vector<1x128xf32> to vector<2x128xf32>
    %5 = arith.addf %2, %4 : vector<2x128xf32>
    %cst_5 = arith.constant 0.000000e+00 : f32
    %6 = vector.broadcast %cst_5 : f32 to vector<2x128xf32>
    %7 = arith.maximumf %5, %6 : vector<2x128xf32>
    %c0_6 = arith.constant 0 : index
    %c0_7 = arith.constant 0 : index
    %8 = vector.load %arg4[%c0_6, %c0_7] : memref<128x4xf32, #tpu.memory_space<vmem>>, vector<128x4xf32>
    %cst_8 = arith.constant dense<0.000000e+00> : vector<2x4xf32>
    %9 = tpu.matmul %7, %8, %cst_8 {dimension_numbers = #tpu.dot_dimension_numbers<[1], [0], [0], [1], [0, 0, 1, 1], [], []>} : vector<2x128xf32>, vector<128x4xf32>, vector<2x4xf32> -> vector<2x4xf32>
    %c0_9 = arith.constant 0 : index
    %c0_10 = arith.constant 0 : index
    %10 = vector.load %arg5[%c0_9, %c0_10] : memref<1x4xf32, #tpu.memory_space<vmem>>, vector<1x4xf32>
    %11 = vector.broadcast %10 : vector<1x4xf32> to vector<2x4xf32>
    %12 = arith.addf %9, %11 : vector<2x4xf32>
    %c0_11 = arith.constant 0 : index
    %c0_12 = arith.constant 0 : index
    %13 = vector.load %arg6[%c0_11, %c0_12] : memref<128x4xf32, #tpu.memory_space<vmem>>, vector<128x4xf32>
    %cst_13 = arith.constant dense<0.000000e+00> : vector<2x4xf32>
    %14 = tpu.matmul %7, %13, %cst_13 {dimension_numbers = #tpu.dot_dimension_numbers<[1], [0], [0], [1], [0, 0, 1, 1], [], []>} : vector<2x128xf32>, vector<128x4xf32>, vector<2x4xf32> -> vector<2x4xf32>
    %c0_14 = arith.constant 0 : index
    %c0_15 = arith.constant 0 : index
    %15 = vector.load %arg7[%c0_14, %c0_15] : memref<1x4xf32, #tpu.memory_space<vmem>>, vector<1x4xf32>
    %16 = vector.broadcast %15 : vector<1x4xf32> to vector<2x4xf32>
    %17 = arith.addf %14, %16 : vector<2x4xf32>
    %18 = math.exp %17 : vector<2x4xf32>
    %c0_16 = arith.constant 0 : index
    %c0_17 = arith.constant 0 : index
    %19 = vector.load %arg1[%c0_16, %c0_17] : memref<2x4xf32, #tpu.memory_space<vmem>>, vector<2x4xf32>
    %20 = arith.mulf %18, %19 : vector<2x4xf32>
    %21 = arith.addf %12, %20 : vector<2x4xf32>
    %c0_18 = arith.constant 0 : index
    %c0_19 = arith.constant 0 : index
    %22 = vector.load %arg8[%c0_18, %c0_19] : memref<4x128xf32, #tpu.memory_space<vmem>>, vector<4x128xf32>
    %cst_20 = arith.constant dense<0.000000e+00> : vector<2x128xf32>
    %23 = tpu.matmul %21, %22, %cst_20 {dimension_numbers = #tpu.dot_dimension_numbers<[1], [0], [0], [1], [0, 0, 1, 1], [], []>} : vector<2x4xf32>, vector<4x128xf32>, vector<2x128xf32> -> vector<2x128xf32>
    %c0_21 = arith.constant 0 : index
    %c0_22 = arith.constant 0 : index
    %24 = vector.load %arg9[%c0_21, %c0_22] : memref<1x128xf32, #tpu.memory_space<vmem>>, vector<1x128xf32>
    %25 = vector.broadcast %24 : vector<1x128xf32> to vector<2x128xf32>
    %26 = arith.addf %23, %25 : vector<2x128xf32>
    %cst_23 = arith.constant 0.000000e+00 : f32
    %27 = vector.broadcast %cst_23 : f32 to vector<2x128xf32>
    %28 = arith.maximumf %26, %27 : vector<2x128xf32>
    %c0_24 = arith.constant 0 : index
    %c0_25 = arith.constant 0 : index
    %29 = vector.load %arg10[%c0_24, %c0_25] : memref<128x288xf32, #tpu.memory_space<vmem>>, vector<128x288xf32>
    %cst_26 = arith.constant dense<0.000000e+00> : vector<2x288xf32>
    %30 = tpu.matmul %28, %29, %cst_26 {dimension_numbers = #tpu.dot_dimension_numbers<[1], [0], [0], [1], [0, 0, 1, 1], [], []>} : vector<2x128xf32>, vector<128x288xf32>, vector<2x288xf32> -> vector<2x288xf32>
    %c0_27 = arith.constant 0 : index
    %c0_28 = arith.constant 0 : index
    %31 = vector.load %arg11[%c0_27, %c0_28] : memref<1x288xf32, #tpu.memory_space<vmem>>, vector<1x288xf32>
    %32 = vector.broadcast %31 : vector<1x288xf32> to vector<2x288xf32>
    %33 = arith.addf %30, %32 : vector<2x288xf32>
    %cst_29 = arith.constant 0.000000e+00 : f32
    %34 = vector.broadcast %cst_29 : f32 to vector<2x288xf32>
    %35 = arith.maximumf %33, %34 : vector<2x288xf32>
    %c0_30 = arith.constant 0 : index
    %c0_31 = arith.constant 0 : index
    %36 = vector.load %arg12[%c0_30, %c0_31] : memref<2x288xf32, #tpu.memory_space<vmem>>, vector<2x288xf32>
    tpu.vector_store %arg12[%c0_30, %c0_31], %35 {strides = array<i32>} : memref<2x288xf32, #tpu.memory_space<vmem>>, vector<2x288xf32>,
    return
  }
}

module attributes {stable_mosaic.version = 11 : i64} {
  func.func @_conv_gemm_bn_relu_kernel(%arg0: memref<16x288xbf16, #tpu.memory_space<vmem>>, %arg1: memref<288x98xbf16, #tpu.memory_space<vmem>>, %arg2: memref<16x1xf32, #tpu.memory_space<vmem>>, %arg3: memref<16x1xf32, #tpu.memory_space<vmem>>, %arg4: memref<16x1xf32, #tpu.memory_space<vmem>>, %arg5: memref<16x98xf32, #tpu.memory_space<vmem>>) attributes {dimension_semantics = [], scalar_prefetch = 0 : i64, scratch_operands = 0 : i64, tpu.core_type = #tpu.core_type<tc>} {
    %c0 = arith.constant 0 : index
    %c0_0 = arith.constant 0 : index
    %0 = vector.load %arg0[%c0, %c0_0] : memref<16x288xbf16, #tpu.memory_space<vmem>>, vector<16x288xbf16>
    %c0_1 = arith.constant 0 : index
    %c0_2 = arith.constant 0 : index
    %1 = vector.load %arg1[%c0_1, %c0_2] : memref<288x98xbf16, #tpu.memory_space<vmem>>, vector<288x98xbf16>
    %cst = arith.constant dense<0.000000e+00> : vector<16x98xf32>
    %2 = tpu.matmul %0, %1, %cst {dimension_numbers = #tpu.dot_dimension_numbers<[1], [0], [0], [1], [0, 0, 1, 1], [], []>} : vector<16x288xbf16>, vector<288x98xbf16>, vector<16x98xf32> -> vector<16x98xf32>
    %c0_3 = arith.constant 0 : index
    %c0_4 = arith.constant 0 : index
    %3 = vector.load %arg2[%c0_3, %c0_4] : memref<16x1xf32, #tpu.memory_space<vmem>>, vector<16x1xf32>
    %4 = vector.broadcast %3 : vector<16x1xf32> to vector<16x98xf32>
    %5 = arith.addf %2, %4 : vector<16x98xf32>
    %cst_5 = arith.constant dense<0.000000e+00> : vector<16xf32>
    %6 = vector.multi_reduction <add>, %5, %cst_5 [1] : vector<16x98xf32> to vector<16xf32>
    %7 = vector.shape_cast %6 : vector<16xf32> to vector<16x1xf32>
    %cst_6 = arith.constant 9.800000e+01 : f32
    %8 = vector.broadcast %cst_6 : f32 to vector<16x1xf32>
    %9 = arith.divf %7, %8 : vector<16x1xf32>
    %10 = vector.broadcast %9 : vector<16x1xf32> to vector<16x98xf32>
    %11 = arith.subf %5, %10 : vector<16x98xf32>
    %12 = arith.mulf %11, %11 : vector<16x98xf32>
    %cst_7 = arith.constant dense<0.000000e+00> : vector<16xf32>
    %13 = vector.multi_reduction <add>, %12, %cst_7 [1] : vector<16x98xf32> to vector<16xf32>
    %14 = vector.shape_cast %13 : vector<16xf32> to vector<16x1xf32>
    %cst_8 = arith.constant 9.800000e+01 : f32
    %15 = vector.broadcast %cst_8 : f32 to vector<16x1xf32>
    %16 = arith.divf %14, %15 : vector<16x1xf32>
    %17 = vector.broadcast %9 : vector<16x1xf32> to vector<16x98xf32>
    %18 = arith.subf %5, %17 : vector<16x98xf32>
    %cst_9 = arith.constant 9.99999974E-6 : f32
    %19 = vector.broadcast %cst_9 : f32 to vector<16x1xf32>
    %20 = arith.addf %16, %19 : vector<16x1xf32>
    %21 = math.rsqrt %20 : vector<16x1xf32>
    %22 = vector.broadcast %21 : vector<16x1xf32> to vector<16x98xf32>
    %23 = arith.mulf %18, %22 : vector<16x98xf32>
    %c0_10 = arith.constant 0 : index
    %c0_11 = arith.constant 0 : index
    %24 = vector.load %arg3[%c0_10, %c0_11] : memref<16x1xf32, #tpu.memory_space<vmem>>, vector<16x1xf32>
    %25 = vector.broadcast %24 : vector<16x1xf32> to vector<16x98xf32>
    %26 = arith.mulf %23, %25 : vector<16x98xf32>
    %c0_12 = arith.constant 0 : index
    %c0_13 = arith.constant 0 : index
    %27 = vector.load %arg4[%c0_12, %c0_13] : memref<16x1xf32, #tpu.memory_space<vmem>>, vector<16x1xf32>
    %28 = vector.broadcast %27 : vector<16x1xf32> to vector<16x98xf32>
    %29 = arith.addf %26, %28 : vector<16x98xf32>
    %cst_14 = arith.constant 0.000000e+00 : f32
    %30 = vector.broadcast %cst_14 : f32 to vector<16x98xf32>
    %31 = arith.maximumf %29, %30 : vector<16x98xf32>
    %c0_15 = arith.constant 0 : index
    %c0_16 = arith.constant 0 : index
    %32 = vector.load %arg5[%c0_15, %c0_16] : memref<16x98xf32, #tpu.memory_space<vmem>>, vector<16x98xf32>
    tpu.vector_store %arg5[%c0_15, %c0_16], %31 {strides = array<i32>} : memref<16x98xf32, #tpu.memory_space<vmem>>, vector<16x98xf32>,
    return
  }
}

module attributes {stable_mosaic.version = 11 : i64} {
  func.func @_conv_gemm_bn_relu_kernel(%arg0: memref<8x144xbf16, #tpu.memory_space<vmem>>, %arg1: memref<144x392xbf16, #tpu.memory_space<vmem>>, %arg2: memref<8x1xf32, #tpu.memory_space<vmem>>, %arg3: memref<8x1xf32, #tpu.memory_space<vmem>>, %arg4: memref<8x1xf32, #tpu.memory_space<vmem>>, %arg5: memref<8x392xf32, #tpu.memory_space<vmem>>) attributes {dimension_semantics = [], scalar_prefetch = 0 : i64, scratch_operands = 0 : i64, tpu.core_type = #tpu.core_type<tc>} {
    %c0 = arith.constant 0 : index
    %c0_0 = arith.constant 0 : index
    %0 = vector.load %arg0[%c0, %c0_0] : memref<8x144xbf16, #tpu.memory_space<vmem>>, vector<8x144xbf16>
    %c0_1 = arith.constant 0 : index
    %c0_2 = arith.constant 0 : index
    %1 = vector.load %arg1[%c0_1, %c0_2] : memref<144x392xbf16, #tpu.memory_space<vmem>>, vector<144x392xbf16>
    %cst = arith.constant dense<0.000000e+00> : vector<8x392xf32>
    %2 = tpu.matmul %0, %1, %cst {dimension_numbers = #tpu.dot_dimension_numbers<[1], [0], [0], [1], [0, 0, 1, 1], [], []>} : vector<8x144xbf16>, vector<144x392xbf16>, vector<8x392xf32> -> vector<8x392xf32>
    %c0_3 = arith.constant 0 : index
    %c0_4 = arith.constant 0 : index
    %3 = vector.load %arg2[%c0_3, %c0_4] : memref<8x1xf32, #tpu.memory_space<vmem>>, vector<8x1xf32>
    %4 = vector.broadcast %3 : vector<8x1xf32> to vector<8x392xf32>
    %5 = arith.addf %2, %4 : vector<8x392xf32>
    %cst_5 = arith.constant dense<0.000000e+00> : vector<8xf32>
    %6 = vector.multi_reduction <add>, %5, %cst_5 [1] : vector<8x392xf32> to vector<8xf32>
    %7 = vector.shape_cast %6 : vector<8xf32> to vector<8x1xf32>
    %cst_6 = arith.constant 3.920000e+02 : f32
    %8 = vector.broadcast %cst_6 : f32 to vector<8x1xf32>
    %9 = arith.divf %7, %8 : vector<8x1xf32>
    %10 = vector.broadcast %9 : vector<8x1xf32> to vector<8x392xf32>
    %11 = arith.subf %5, %10 : vector<8x392xf32>
    %12 = arith.mulf %11, %11 : vector<8x392xf32>
    %cst_7 = arith.constant dense<0.000000e+00> : vector<8xf32>
    %13 = vector.multi_reduction <add>, %12, %cst_7 [1] : vector<8x392xf32> to vector<8xf32>
    %14 = vector.shape_cast %13 : vector<8xf32> to vector<8x1xf32>
    %cst_8 = arith.constant 3.920000e+02 : f32
    %15 = vector.broadcast %cst_8 : f32 to vector<8x1xf32>
    %16 = arith.divf %14, %15 : vector<8x1xf32>
    %17 = vector.broadcast %9 : vector<8x1xf32> to vector<8x392xf32>
    %18 = arith.subf %5, %17 : vector<8x392xf32>
    %cst_9 = arith.constant 9.99999974E-6 : f32
    %19 = vector.broadcast %cst_9 : f32 to vector<8x1xf32>
    %20 = arith.addf %16, %19 : vector<8x1xf32>
    %21 = math.rsqrt %20 : vector<8x1xf32>
    %22 = vector.broadcast %21 : vector<8x1xf32> to vector<8x392xf32>
    %23 = arith.mulf %18, %22 : vector<8x392xf32>
    %c0_10 = arith.constant 0 : index
    %c0_11 = arith.constant 0 : index
    %24 = vector.load %arg3[%c0_10, %c0_11] : memref<8x1xf32, #tpu.memory_space<vmem>>, vector<8x1xf32>
    %25 = vector.broadcast %24 : vector<8x1xf32> to vector<8x392xf32>
    %26 = arith.mulf %23, %25 : vector<8x392xf32>
    %c0_12 = arith.constant 0 : index
    %c0_13 = arith.constant 0 : index
    %27 = vector.load %arg4[%c0_12, %c0_13] : memref<8x1xf32, #tpu.memory_space<vmem>>, vector<8x1xf32>
    %28 = vector.broadcast %27 : vector<8x1xf32> to vector<8x392xf32>
    %29 = arith.addf %26, %28 : vector<8x392xf32>
    %cst_14 = arith.constant 0.000000e+00 : f32
    %30 = vector.broadcast %cst_14 : f32 to vector<8x392xf32>
    %31 = arith.maximumf %29, %30 : vector<8x392xf32>
    %c0_15 = arith.constant 0 : index
    %c0_16 = arith.constant 0 : index
    %32 = vector.load %arg5[%c0_15, %c0_16] : memref<8x392xf32, #tpu.memory_space<vmem>>, vector<8x392xf32>
    tpu.vector_store %arg5[%c0_15, %c0_16], %31 {strides = array<i32>} : memref<8x392xf32, #tpu.memory_space<vmem>>, vector<8x392xf32>,
    return
  }
}

module attributes {stable_mosaic.version = 11 : i64} {
  func.func @_conv_gemm_kernel(%arg0: memref<1x72xbf16, #tpu.memory_space<vmem>>, %arg1: memref<72x1568xbf16, #tpu.memory_space<vmem>>, %arg2: memref<1x1xf32, #tpu.memory_space<vmem>>, %arg3: memref<1x1568xf32, #tpu.memory_space<vmem>>) attributes {dimension_semantics = [], scalar_prefetch = 0 : i64, scratch_operands = 0 : i64, tpu.core_type = #tpu.core_type<tc>} {
    %c0 = arith.constant 0 : index
    %c0_0 = arith.constant 0 : index
    %0 = vector.load %arg0[%c0, %c0_0] : memref<1x72xbf16, #tpu.memory_space<vmem>>, vector<1x72xbf16>
    %c0_1 = arith.constant 0 : index
    %c0_2 = arith.constant 0 : index
    %1 = vector.load %arg1[%c0_1, %c0_2] : memref<72x1568xbf16, #tpu.memory_space<vmem>>, vector<72x1568xbf16>
    %cst = arith.constant dense<0.000000e+00> : vector<1x1568xf32>
    %2 = tpu.matmul %0, %1, %cst {dimension_numbers = #tpu.dot_dimension_numbers<[1], [0], [0], [1], [0, 0, 1, 1], [], []>} : vector<1x72xbf16>, vector<72x1568xbf16>, vector<1x1568xf32> -> vector<1x1568xf32>
    %c0_3 = arith.constant 0 : index
    %c0_4 = arith.constant 0 : index
    %3 = vector.load %arg2[%c0_3, %c0_4] : memref<1x1xf32, #tpu.memory_space<vmem>>, vector<1x1xf32>
    %4 = vector.broadcast %3 : vector<1x1xf32> to vector<1x1568xf32>
    %5 = arith.addf %2, %4 : vector<1x1568xf32>
    %cst_5 = arith.constant 5.000000e-01 : f32
    %6 = vector.broadcast %cst_5 : f32 to vector<1x1568xf32>
    %7 = arith.mulf %6, %5 : vector<1x1568xf32>
    %8 = math.tanh %7 : vector<1x1568xf32>
    %cst_6 = arith.constant 1.000000e+00 : f32
    %9 = vector.broadcast %cst_6 : f32 to vector<1x1568xf32>
    %10 = arith.addf %8, %9 : vector<1x1568xf32>
    %cst_7 = arith.constant 5.000000e-01 : f32
    %11 = vector.broadcast %cst_7 : f32 to vector<1x1568xf32>
    %12 = arith.mulf %11, %10 : vector<1x1568xf32>
    %c0_8 = arith.constant 0 : index
    %c0_9 = arith.constant 0 : index
    %13 = vector.load %arg3[%c0_8, %c0_9] : memref<1x1568xf32, #tpu.memory_space<vmem>>, vector<1x1568xf32>
    tpu.vector_store %arg3[%c0_8, %c0_9], %12 {strides = array<i32>} : memref<1x1568xf32, #tpu.memory_space<vmem>>, vector<1x1568xf32>,
    return
  }
}

</mosaic_0001>

<bundles_post_ra>
// kernel: vae_forward.7
= control target key start
LH: loop header
LB: loop body
LE: loop exit
PB: predicated region body
PF: predicated region fallthrough
CT: control target
= control target key end

     0   :  { %vm46_vm0 = vcmask 1043456   ;;  %vm47_vm1 = vcmask 1044480   ;;  %v172_v1 = vmov 0   ;;  %v173_v2 = vmov 65535   ;;  %s224_s1 = inlined_call_operand.vmem [shape: bf16[9,392], index: 1, kind: input, shape index: {}]   ;;  %s225_s2 = inlined_call_operand.vmem [shape: f32[8,1], index: 2, kind: input, shape index: {}]   ;;  %s226_s0 = inlined_call_operand.vmem [shape: bf16[8,9], index: 0, kind: input, shape index: {}]   ;;  %s227_s3 = inlined_call_operand.vmem [shape: f32[8,392], index: 3, kind: output, shape index: {}]  }
   0x1   :  { %v166_v0 = vld [vmem:[%s224_s1 + $0x4] ss:$16 sps:$4 sm:$0x1f]   ;;  %94 = vmatprep.mubr.bf16.mxu0 %v172_v1  ;;  %135 = vmatprep.mubr.bf16.mxu1 %v172_v1  ;;  %v48_v3 = vsel %vm46_vm0, 4294967295, %v173_v2  ;;  %v15_v13 = vld [vmem:[%s226_s0] sm:$0xf] }
   0x2   :  { %165 = vset.pattern.permute.xlu0 %v172_v1  ;;  %v49_v4 = vsel %vm47_vm1, %v48_v3, 0  ;;  %v168_v5 = vld [vmem:[%s224_s1 + $0xc] ss:$16 sps:$4 sm:$0x1f]   ;;  %v20_v6 = vld [vmem:[%s225_s2] sm:$0xff]  ;;  %vm42_vm2 = vcmask 72704  }
   0x3   :  { %v54_v7 = vand.u32 %v166_v0, %v49_v4  ;;  %v170_v8 = vld [vmem:[%s224_s1] ss:$16 sps:$4 sm:$0x1f]   ;;  %v171_v9 = vld [vmem:[%s224_s1 + $0x8] ss:$16 sps:$4 sm:$0x1f]   ;;  %23 = vperm.xlu0 %165, %v20_v6   ;;  %v60_v10 = vand.u32 %v168_v5, %v49_v4 }
   0x4   :  { %v51_v11 = vand.u32 %v170_v8, %v49_v4  ;;  %v57_v12 = vand.u32 %v171_v9, %v49_v4  ;;  %vm151_vm3 = vcmask 64512  }
   0x5   :  { %76 = vmatprep.subr.bf16.mxu0 %v54_v7  ;;  %117 = vmatprep.subr.bf16.mxu1 %v60_v10 }
   0x6   :  { %77 = vmatpush1.bf16.msra.mxu0 %v51_v11  ;;  %118 = vmatpush1.bf16.msra.mxu1 %v57_v12 }
   0x9   :  { %161 = vmatmul.mubr.msk.bf16.vlgmr.msra.gmra.mxu0 %vm42_vm2, %v15_v13  ;;  %162 = vmatmul.mubr.msk.bf16.vlgmr.msra.gmra.mxu1 %vm42_vm2, %v15_v13 }
  0x7e   :  { %v24_v14 = vpop.permute.xlu0 %23 }
  0xc9   :  { %v96_v15 = vpop.f32.mrf.mxu0  ;;  %v137_v16 = vpop.f32.mrf.mxu1 }
  0xca   :  { %v97_v17 = vadd.f32 %v96_v15, %v24_v14  ;;  %v138_v18 = vadd.f32 %v137_v16, %v24_v14 }
  0xcb   :  { %v98_v19 = vpop.f32.mrf.mxu0  ;;  %v139_v20 = vpop.f32.mrf.mxu1 }
  0xcc   :  { %v144_v21 = vmax.f32 %v97_v17, 0.0  ;;  %v146_v22 = vmax.f32 %v138_v18, 0.0  ;;  %v99_v23 = vadd.f32 %v98_v19, %v24_v14  ;;  %v140_v24 = vadd.f32 %v139_v20, %v24_v14 }
  0xcd   :  { %v100_v25 = vpop.f32.mrf.mxu0  ;;  %v141_v26 = vpop.f32.mrf.mxu1 }
  0xce   :  { %148 = vst [vmem:[%s227_s3] sm:$0xff] %v144_v21  ;;  %150 = vst [vmem:[%s227_s3 + $0x10] sm:$0xff] %v146_v22  ;;  %v145_v27 = vmax.f32 %v99_v23, 0.0  ;;  %v147_v28 = vmax.f32 %v140_v24, 0.0 }
  0xcf   :  { %v101_v29 = vpop.f32.mrf.mxu0  ;;  %v142_v30 = vpop.f32.mrf.mxu1 }
  0xd0   :  { %149 = vst [vmem:[%s227_s3 + $0x8] sm:$0xff] %v145_v27  ;;  %152 = vst.msk [vmem:[%s227_s3 + $0x18] sm:$0xff] %vm151_vm3, %v147_v28 }

// kernel: vae_forward.8
= control target key start
LH: loop header
LB: loop body
LE: loop exit
PB: predicated region body
PF: predicated region fallthrough
CT: control target
= control target key end

     0   :  { %vm80_vm0 = vcmask 1043456   ;;  %v231_v0 = vmov 0.0   ;;  %vm232_vm1 = vmmov 0   ;;  %v233_v3 = vmov 0   ;;  %s312_s1 = inlined_call_operand.vmem [shape: bf16[72,98], index: 1, kind: input, shape index: {}]   ;;  %s313_s2 = inlined_call_operand.vmem [shape: f32[16,1], index: 2, kind: input, shape index: {}]   ;;  %s314_s0 = inlined_call_operand.vmem [shape: bf16[16,72], index: 0, kind: input, shape index: {}]   ;;  %s315_s3 = inlined_call_operand.vmem [shape: f32[16,1], index: 3, kind: input, shape index: {}]   ;;  %s316_s4 = inlined_call_operand.vmem [shape: f32[16,1], index: 4, kind: input, shape index: {}]   ;;  %s317_s5 = inlined_call_operand.vmem [shape: f32[16,98], index: 5, kind: output, shape index: {}]  }
   0x1   :  { %202 = vmatprep.subr.bf16.mxu0 %v231_v0  ;;  %v221_v1 = vld [vmem:[%s312_s1 + $0x20] ss:$0 sps:$4 sm:$0xff]   ;;  %212 = vmatprep.mubr.msk.bf16.mxu0 %vm232_vm1, %v231_v0  ;;  %v222_v4 = vld [vmem:[%s312_s1 + $0x18] sm:$0xff]   ;;  %v223_v6 = vld [vmem:[%s312_s1 + $0x10] sm:$0xff]   ;;  %vm76_vm2 = vcmask 588800   ;;  %vm125_vm3 = vcmask 801792  }
   0x2   :  { %v82_v2 = vsel %vm80_vm0, %v221_v1, 0  ;;  %219 = vset.pattern.permute.xlu0 %v233_v3  ;;  %220 = vset.pattern.permute.xlu1 %v233_v3  ;;  %v32_v5 = vld [vmem:[%s313_s2] sm:$0xff]  ;;  %v33_v7 = vld [vmem:[%s313_s2 + $0x8] sm:$0xff] }
   0x3   :  { %203 = vmatpush3.bf16.msra.mxu0 %v82_v2  ;;  %36 = vperm.xlu0 %219, %v32_v5   ;;  %v224_v8 = vld [vmem:[%s312_s1 + $0x8] sm:$0xff]   ;;  %v225_v9 = vld [vmem:[%s312_s1] sm:$0xff]  }
   0x4   :  { %204 = vmatprep.subr.bf16.mxu0 %v231_v0  ;;  %v226_v10 = vld [vmem:[%s314_s0] sm:$0xff]   ;;  %v154_v22 = vld [vmem:[%s315_s3 + $0x8] sm:$0xff] }
   0x5   :  { %v153_v21 = vld [vmem:[%s315_s3] sm:$0xff]  ;;  %v168_v34 = vld [vmem:[%s316_s4 + $0x8] sm:$0xff] }
   0x6   :  { %v167_v23 = vld [vmem:[%s316_s4] sm:$0xff] }
   0x7   :  { %205 = vmatpush3.bf16.msra.mxu0 %v222_v4  ;;  %41 = vperm.xlu0 %219, %v33_v7  }
   0x8   :  { %206 = vmatprep.subr.bf16.mxu0 %v231_v0 }
   0xb   :  { %207 = vmatpush3.bf16.msra.mxu0 %v223_v6 }
   0xc   :  { %208 = vmatprep.subr.bf16.mxu0 %v231_v0 }
   0xf   :  { %209 = vmatpush3.bf16.msra.mxu0 %v224_v8 }
  0x10   :  { %210 = vmatprep.subr.bf16.mxu0 %v231_v0 }
  0x13   :  { %211 = vmatpush3.bf16.msra.mxu0 %v225_v9 }
  0x16   :  { %213 = vmatmul.mubr.msk.bf16.vlgmr.msra.gmra.mxu0 %vm76_vm2, %v226_v10 }
  0x7e   :  { %v37_v11 = vpop.permute.xlu0 %36 }
  0x82   :  { %v42_v16 = vpop.permute.xlu0 %41 }
  0xd6   :  { %v118_v12 = vpop.f32.mrf.mxu0 }
  0xd7   :  { %v119_v13 = vadd.f32 %v118_v12, %v37_v11 }
  0xd8   :  { %v214_v14 = vpop.f32.mrf.mxu0 }
  0xd9   :  { %v126_v15 = vsel %vm125_vm3, %v119_v13, 0.0 }
  0xda   :  { %127 = vadd.xlane.f32.xlu1 %v126_v15  ;;  %v121_v17 = vpop.f32.mrf.mxu0 }
  0xdb   :  { %v122_v18 = vadd.f32 %v121_v17, %v42_v16 }
  0xdc   :  { %v215_v19 = vpop.f32.mrf.mxu0 }
  0xdd   :  { %v129_v20 = vsel %vm125_vm3, %v122_v18, 0.0 }
  0xde   :  { %130 = vadd.xlane.f32.xlu1 %v129_v20 }
  0xef   :  { %157 = vperm.xlu1 %220, %v153_v21  }
  0xf3   :  { %162 = vperm.xlu1 %220, %v154_v22  }
  0xf7   :  { %171 = vperm.xlu1 %220, %v167_v23  }
 0x163   :  { %v128_v24 = vpop.xlane.xlu1 %127 }
 0x164   :  { %v133_v25 = vmul.f32 0.010204081, %v128_v24 }
 0x166   :  { %v135_v26 = vsub.f32 %v119_v13, %v133_v25 }
 0x167   :  { %v131_v27 = vpop.xlane.xlu1 %130 }
 0x168   :  { %v134_v28 = vmul.f32 0.010204081, %v131_v27  ;;  %v137_v29 = vmul.f32 %v135_v26, %v135_v26 }
 0x16a   :  { %v136_v30 = vsub.f32 %v122_v18, %v134_v28  ;;  %v139_v31 = vsel %vm125_vm3, %v137_v29, 0.0 }
 0x16b   :  { %140 = vadd.xlane.f32.xlu0 %v139_v31  ;;  %v158_v35 = vpop.permute.xlu1 %157 }
 0x16c   :  { %v138_v32 = vmul.f32 %v136_v30, %v136_v30 }
 0x16e   :  { %v142_v33 = vsel %vm125_vm3, %v138_v32, 0.0 }
 0x16f   :  { %143 = vadd.xlane.f32.xlu1 %v142_v33  ;;  %v163_v36 = vpop.permute.xlu1 %162 }
 0x173   :  { %v172_v37 = vpop.permute.xlu1 %171 }
 0x180   :  { %176 = vperm.xlu1 %220, %v168_v34  }
 0x1f4   :  { %v141_v38 = vpop.xlane.xlu0 %140 }
 0x1f5   :  { %v145_v39 = vmul.f32 0.010204081, %v141_v38 }
 0x1f7   :  { %v147_v40 = vadd.f32 1e-05, %v145_v39 }
 0x1f8   :  { %v144_v41 = vpop.xlane.xlu1 %143 }
 0x1f9   :  { %227 = vrsqrt.f32 %v147_v40  ;;  %v146_v42 = vmul.f32 0.010204081, %v144_v41 }
 0x1fb   :  { %v148_v43 = vadd.f32 1e-05, %v146_v42 }
 0x1fc   :  { %v177_v52 = vpop.permute.xlu1 %176 }
 0x1fd   :  { %229 = vrsqrt.f32 %v148_v43 }
 0x206   :  { %v228_v44 = vpop.eup %227 }
 0x207   :  { %v151_v45 = vmul.f32 %v228_v44, %v135_v26 }
 0x209   :  { %v165_v46 = vmul.f32 %v158_v35, %v151_v45 }
 0x20a   :  { %v230_v47 = vpop.eup %229 }
 0x20b   :  { %v152_v48 = vmul.f32 %v230_v47, %v136_v30  ;;  %v179_v49 = vadd.f32 %v172_v37, %v165_v46 }
 0x20d   :  { %v166_v50 = vmul.f32 %v163_v36, %v152_v48  ;;  %v181_v51 = vmax.f32 %v179_v49, 0.0 }
 0x20f   :  { %183 = vst.msk [vmem:[%s317_s5] sm:$0xff] %vm125_vm3, %v181_v51  ;;  %v180_v53 = vadd.f32 %v177_v52, %v166_v50 }
 0x211   :  { %v182_v54 = vmax.f32 %v180_v53, 0.0 }
 0x213   :  { %184 = vst.msk [vmem:[%s317_s5 + $0x8] sm:$0xff] %vm125_vm3, %v182_v54 }

// kernel: vae_forward.9
= control target key start
LH: loop header
LB: loop body
LE: loop exit
PB: predicated region body
PF: predicated region fallthrough
CT: control target
= control target key end

     0   :  { %v253_v0 = vmov 0   ;;  %vm133_vm0 = vcmask 130048   ;;  %vm193_vm1 = vcmask 146432   ;;  %s341_s1 = inlined_call_operand.vmem [shape: bf16[144,18], index: 1, kind: input, shape index: {}]   ;;  %s342_s0 = inlined_call_operand.vmem [shape: bf16[32,144], index: 0, kind: input, shape index: {}]   ;;  %s343_s2 = inlined_call_operand.vmem [shape: f32[32,1], index: 2, kind: input, shape index: {}]   ;;  %s344_s3 = inlined_call_operand.vmem [shape: f32[32,18], index: 3, kind: output, shape index: {}]  }
   0x1   :  { %140 = vmatprep.subr.bf16.mxu0 %v253_v0  ;;  %217 = vmatprep.subr.bf16.mxu1 %v253_v0  ;;  %v238_v1 = vld [vmem:[%s341_s1 + $0x38] sm:$0xff]   ;;  %v239_v2 = vld [vmem:[%s341_s1 + $0x30] sm:$0xff]   ;;  %v240_v3 = vld [vmem:[%s341_s1 + $0x28] sm:$0xff]  }
   0x2   :  { %237 = vset.pattern.permute.xlu1 %v253_v0  ;;  %236 = vset.pattern.permute.xlu0 %v253_v0  ;;  %v241_v4 = vld [vmem:[%s341_s1 + $0x20] sm:$0xff]   ;;  %v252_v6 = vld [vmem:[%s342_s0 + $0x14] ss:$8 sps:$4 sm:$0xff]   ;;  %v38_v11 = vld [vmem:[%s343_s2 + $0x8] sm:$0xff] }
   0x3   :  { %141 = vmatpush1.bf16.msra.mxu0 %v238_v1  ;;  %226 = vmatpush1.bf16.msra.mxu1 %v238_v1  ;;  %v249_v5 = vld [vmem:[%s342_s0 + $0x4] ss:$8 sps:$4 sm:$0xff]   ;;  %v39_v7 = vld [vmem:[%s343_s2 + $0x10] sm:$0xff]  ;;  %v40_v9 = vld [vmem:[%s343_s2 + $0x18] sm:$0xff] }
   0x4   :  { %142 = vmatprep.subr.bf16.mxu0 %v253_v0  ;;  %218 = vmatprep.subr.bf16.mxu1 %v253_v0  ;;  %v37_v8 = vld [vmem:[%s343_s2] sm:$0xff]  ;;  %v242_v10 = vld [vmem:[%s341_s1 + $0x18] sm:$0xff]   ;;  %v243_v12 = vld [vmem:[%s341_s1 + $0x10] sm:$0xff]  }
   0x5   :  { %215 = vmatprep.mubr.msk.bf16.mxu0 %vm133_vm0, %v249_v5  ;;  %53 = vperm.xlu1 %237, %v39_v7   ;;  %v244_v13 = vld [vmem:[%s341_s1 + $0x8] sm:$0xff]   ;;  %v245_v14 = vld [vmem:[%s341_s1] sm:$0xff]   ;;  %v250_v17 = vld [vmem:[%s342_s0 + $0x10] ss:$8 sps:$4 sm:$0xff]  }
   0x6   :  { %216 = vmatprep.mubr.msk.bf16.mxu1 %vm133_vm0, %v252_v6  ;;  %43 = vperm.xlu0 %236, %v37_v8   ;;  %v246_v15 = vld [vmem:[%s341_s1 + $0x40] sm:$0xff]  }
   0x7   :  { %143 = vmatpush1.bf16.msra.mxu0 %v239_v2  ;;  %227 = vmatpush1.bf16.msra.mxu1 %v239_v2  ;;  %v247_v16 = vld [vmem:[%s342_s0] ss:$8 sps:$4 sm:$0xff]  }
   0x8   :  { %144 = vmatprep.subr.bf16.mxu0 %v253_v0  ;;  %219 = vmatprep.subr.bf16.mxu1 %v253_v0 }
   0x9   :  { %58 = vperm.xlu1 %237, %v40_v9  }
   0xa   :  { %48 = vperm.xlu0 %236, %v38_v11  }
   0xb   :  { %145 = vmatpush1.bf16.msra.mxu0 %v240_v3  ;;  %228 = vmatpush1.bf16.msra.mxu1 %v240_v3 }
   0xc   :  { %146 = vmatprep.subr.bf16.mxu0 %v253_v0  ;;  %220 = vmatprep.subr.bf16.mxu1 %v253_v0 }
   0xf   :  { %147 = vmatpush1.bf16.msra.mxu0 %v241_v4  ;;  %229 = vmatpush1.bf16.msra.mxu1 %v241_v4 }
  0x10   :  { %148 = vmatprep.subr.bf16.mxu0 %v253_v0  ;;  %221 = vmatprep.subr.bf16.mxu1 %v253_v0 }
  0x13   :  { %149 = vmatpush1.bf16.msra.mxu0 %v242_v10  ;;  %230 = vmatpush1.bf16.msra.mxu1 %v242_v10 }
  0x14   :  { %150 = vmatprep.subr.bf16.mxu0 %v253_v0  ;;  %222 = vmatprep.subr.bf16.mxu1 %v253_v0 }
  0x17   :  { %151 = vmatpush1.bf16.msra.mxu0 %v243_v12  ;;  %231 = vmatpush1.bf16.msra.mxu1 %v243_v12 }
  0x18   :  { %152 = vmatprep.subr.bf16.mxu0 %v253_v0  ;;  %223 = vmatprep.subr.bf16.mxu1 %v253_v0 }
  0x1b   :  { %153 = vmatpush1.bf16.msra.mxu0 %v244_v13  ;;  %232 = vmatpush1.bf16.msra.mxu1 %v244_v13 }
  0x1c   :  { %154 = vmatprep.subr.bf16.mxu0 %v253_v0  ;;  %224 = vmatprep.subr.bf16.mxu1 %v253_v0 }
  0x1f   :  { %155 = vmatpush1.bf16.msra.mxu0 %v245_v14  ;;  %233 = vmatpush1.bf16.msra.mxu1 %v245_v14 }
  0x20   :  { %170 = vmatprep.subr.bf16.mxu0 %v253_v0  ;;  %225 = vmatprep.subr.bf16.mxu1 %v253_v0 }
  0x23   :  { %171 = vmatpush2.bf16.msra.mxu0 %v246_v15  ;;  %234 = vmatpush2.bf16.msra.mxu1 %v246_v15 }
  0x26   :  { %173 = vmatmul.mubr.bf16.vlgmr.msra.gmra.mxu0 %v247_v16  ;;  %181 = vmatmul.mubr.bf16.vlgmr.msra.gmra.mxu1 %v250_v17 }
  0x80   :  { %v54_v18 = vpop.permute.xlu1 %53 }
  0x81   :  { %v44_v19 = vpop.permute.xlu0 %43 }
  0x84   :  { %v59_v26 = vpop.permute.xlu1 %58 }
  0x85   :  { %v49_v27 = vpop.permute.xlu0 %48 }
  0xe6   :  { %v174_v20 = vpop.f32.mrf.mxu0  ;;  %v182_v21 = vpop.f32.mrf.mxu1 }
  0xe7   :  { %v175_v22 = vadd.f32 %v174_v20, %v44_v19  ;;  %v183_v23 = vadd.f32 %v182_v21, %v54_v18 }
  0xe8   :  { %v176_v24 = vpop.f32.mrf.mxu0  ;;  %v184_v25 = vpop.f32.mrf.mxu1 }
  0xe9   :  { %v189_v28 = vmax.f32 %v175_v22, 0.0  ;;  %v191_v29 = vmax.f32 %v183_v23, 0.0 }
  0xea   :  { %v177_v30 = vpop.f32.mrf.mxu0  ;;  %v185_v31 = vpop.f32.mrf.mxu1 }
  0xeb   :  { %194 = vst.msk [vmem:[%s344_s3] sm:$0xff] %vm193_vm1, %v189_v28  ;;  %196 = vst.msk [vmem:[%s344_s3 + $0x10] sm:$0xff] %vm193_vm1, %v191_v29  ;;  %v178_v32 = vadd.f32 %v177_v30, %v49_v27  ;;  %v186_v33 = vadd.f32 %v185_v31, %v59_v26 }
  0xec   :  { %v179_v34 = vpop.f32.mrf.mxu0  ;;  %v187_v35 = vpop.f32.mrf.mxu1 }
  0xed   :  { %v190_v36 = vmax.f32 %v178_v32, 0.0  ;;  %v192_v37 = vmax.f32 %v186_v33, 0.0 }
  0xef   :  { %195 = vst.msk [vmem:[%s344_s3 + $0x8] sm:$0xff] %vm193_vm1, %v190_v36  ;;  %197 = vst.msk [vmem:[%s344_s3 + $0x18] sm:$0xff] %vm193_vm1, %v192_v37 }

// kernel: vae_forward.10
= control target key start
LH: loop header
LB: loop body
LE: loop exit
PB: predicated region body
PF: predicated region fallthrough
CT: control target
= control target key end

     0   :  { %v992_v3 = vmov 0.0   ;;  %v993_v4 = vmov 1983009808   ;;  %v90_v6 = vlaneseq  ;;  %vm994_vm0 = vmmov 0   ;;  %s1516_s2 = inlined_call_operand.vmem [shape: f32[288,128], index: 2, kind: input, shape index: {}]   ;;  %s1517_s0 = inlined_call_operand.vmem [shape: f32[2,288], index: 0, kind: input, shape index: {}]   ;;  %s1518_s4 = inlined_call_operand.vmem [shape: f32[128,4], index: 4, kind: input, shape index: {}]   ;;  %s1519_s6 = inlined_call_operand.vmem [shape: f32[128,4], index: 6, kind: input, shape index: {}]   ;;  %s1520_s3 = inlined_call_operand.vmem [shape: f32[1,128], index: 3, kind: input, shape index: {}]   ;;  %s1521_s8 = inlined_call_operand.vmem [shape: f32[4,128], index: 8, kind: input, shape index: {}]   ;;  %s1522_s10 = inlined_call_operand.vmem [shape: f32[128,288], index: 10, kind: input, shape index: {}]   ;;  %s1523_s7 = inlined_call_operand.vmem [shape: f32[1,4], index: 7, kind: input, shape index: {}]   ;;  %s1524_s5 = inlined_call_operand.vmem [shape: f32[1,4], index: 5, kind: input, shape index: {}]   ;;  %s1525_s1 = inlined_call_operand.vmem [shape: f32[2,4], index: 1, kind: input, shape index: {}]   ;;  %s1526_s9 = inlined_call_operand.vmem [shape: f32[1,128], index: 9, kind: input, shape index: {}]   ;;  %s1527_s11 = inlined_call_operand.vmem [shape: f32[1,288], index: 11, kind: input, shape index: {}]   ;;  %s1528_s12 = inlined_call_operand.vmem [shape: f32[2,288], index: 12, kind: output, shape index: {}]  }
   0x1   :  { %v73_v0 = vld [vmem:[%s1516_s2 + $0xf8] sm:$0xff]  ;;  %v72_v2 = vld [vmem:[%s1516_s2 + $0xf0] sm:$0xff]  ;;  %865 = vmatprep.subr.mxu1 %v992_v3  ;;  %v88_v5 = vunpack.c.l.s4 %v993_v4  ;;  %873 = vmatprep.mubr.msk.f32.mxu1 %vm994_vm0, %v992_v3  ;;  %v71_v8 = vld [vmem:[%s1516_s2 + $0xe8] sm:$0xff]  ;;  %vm104_vm1 = vcmask 261120   ;;  %vm451_vm2 = vcmask 1043456   ;;  %vm447_vm3 = vcmask 31744  }
   0x2   :  { %v57_v1 = vld [vmem:[%s1516_s2 + $0x78] sm:$0xff]  ;;  %772 = vmatprep.subr.mxu0 %v73_v0  ;;  %v56_v7 = vld [vmem:[%s1516_s2 + $0x70] sm:$0xff]  ;;  %v55_v9 = vld [vmem:[%s1516_s2 + $0x68] sm:$0xff]  ;;  %v1084_v12 = vshrl.u32 %v90_v6, 7  ;;  %vm755_vm4 = vcmask 1041408   ;;  %vm756_vm5 = vcmask 1043458  }
   0x3   :  { %773 = vmatpush3.msra.mxu0 %v57_v1  ;;  %v70_v10 = vld [vmem:[%s1516_s2 + $0xe0] sm:$0xff]  ;;  %v89_v11 = vunpack.c.0.s8 %v88_v5  ;;  %v69_v14 = vld [vmem:[%s1516_s2 + $0xd8] sm:$0xff]  ;;  %v68_v16 = vld [vmem:[%s1516_s2 + $0xd0] sm:$0xff]  ;;  %vm758_vm7 = vcmask 259076  }
   0x4   :  { %774 = vmatprep.subr.mxu0 %v72_v2  ;;  %v54_v13 = vld [vmem:[%s1516_s2 + $0x60] sm:$0xff]  ;;  %v53_v15 = vld [vmem:[%s1516_s2 + $0x58] sm:$0xff]  ;;  %v52_v18 = vld [vmem:[%s1516_s2 + $0x50] sm:$0xff] }
   0x5   :  { %775 = vmatpush3.msra.mxu0 %v56_v7  ;;  %v1099_v17 = vsub.s32 %v89_v11, %v1084_v12  ;;  %v67_v19 = vld [vmem:[%s1516_s2 + $0xc8] sm:$0xff]  ;;  %v77_v20 = vld [vmem:[%s1516_s2 + $0x118] sm:$0xff]  ;;  %v41_v22 = vld [vmem:[%s1517_s0] sm:$0x3f] }
   0x6   :  { %776 = vmatprep.subr.mxu0 %v71_v8  ;;  %v51_v21 = vld [vmem:[%s1516_s2 + $0x48] sm:$0xff]  ;;  %866 = vmatpush3.msra.mxu1 %v77_v20  ;;  %v76_v23 = vld [vmem:[%s1516_s2 + $0x110] sm:$0xff]  ;;  %v66_v24 = vld [vmem:[%s1516_s2 + $0xc0] sm:$0xff]  ;;  %v86_v25 = vcombine.high %v41_v22, %v41_v22 }
   0x7   :  { %777 = vmatpush3.msra.mxu0 %v55_v9  ;;  %867 = vmatprep.subr.mxu1 %v992_v3  ;;  %v1124_v26 = vrot.slane %v41_v22, %v1099_v17  ;;  %v75_v27 = vld [vmem:[%s1516_s2 + $0x108] sm:$0xff]  ;;  %v50_v28 = vld [vmem:[%s1516_s2 + $0x40] sm:$0xff]  ;;  %v65_v29 = vld [vmem:[%s1516_s2 + $0xb8] sm:$0xff] }
   0x8   :  { %778 = vmatprep.subr.mxu0 %v70_v10  ;;  %868 = vmatpush3.msra.mxu1 %v76_v23  ;;  %v49_v31 = vld [vmem:[%s1516_s2 + $0x38] sm:$0xff]  ;;  %v100_v32 = vrot.slane %v86_v25, %v1099_v17  ;;  %v74_v33 = vld [vmem:[%s1516_s2 + $0x100] sm:$0xff]  ;;  %v64_v34 = vld [vmem:[%s1516_s2 + $0xb0] sm:$0xff] }
   0x9   :  { %779 = vmatpush3.msra.mxu0 %v54_v13  ;;  %v101_v30 = vcombine.high %v1124_v26, %v1124_v26  ;;  %869 = vmatprep.subr.mxu1 %v992_v3  ;;  %v48_v35 = vld [vmem:[%s1516_s2 + $0x30] sm:$0xff]  ;;  %v63_v36 = vld [vmem:[%s1516_s2 + $0xa8] sm:$0xff]  ;;  %v263_v37 = vld [vmem:[%s1518_s4 + $0x78] sm:$0xff] }
   0xa   :  { %780 = vmatprep.subr.mxu0 %v69_v14  ;;  %870 = vmatpush3.msra.mxu1 %v75_v27  ;;  %v47_v38 = vld [vmem:[%s1516_s2 + $0x28] sm:$0xff]  ;;  %v62_v39 = vld [vmem:[%s1516_s2 + $0xa0] sm:$0xff]  ;;  %v262_v40 = vld [vmem:[%s1518_s4 + $0x70] sm:$0xff] }
   0xb   :  { %781 = vmatpush3.msra.mxu0 %v53_v15  ;;  %171 = vmatprep.mubr.f32.mxu0 %v101_v30  ;;  %v46_v41 = vld [vmem:[%s1516_s2 + $0x20] sm:$0xff]  ;;  %v61_v42 = vld [vmem:[%s1516_s2 + $0x98] sm:$0xff]  ;;  %v261_v43 = vld [vmem:[%s1518_s4 + $0x68] sm:$0xff] }
   0xc   :  { %782 = vmatprep.subr.mxu0 %v68_v16  ;;  %871 = vmatprep.subr.mxu1 %v992_v3  ;;  %v45_v44 = vld [vmem:[%s1516_s2 + $0x18] sm:$0xff]  ;;  %v60_v45 = vld [vmem:[%s1516_s2 + $0x90] sm:$0xff]  ;;  %v260_v46 = vld [vmem:[%s1518_s4 + $0x60] sm:$0xff] }
   0xd   :  { %783 = vmatpush3.msra.mxu0 %v52_v18  ;;  %872 = vmatpush3.msra.mxu1 %v74_v33  ;;  %v44_v47 = vld [vmem:[%s1516_s2 + $0x10] sm:$0xff]  ;;  %v59_v48 = vld [vmem:[%s1516_s2 + $0x88] sm:$0xff]  ;;  %v259_v49 = vld [vmem:[%s1518_s4 + $0x58] sm:$0xff] }
   0xe   :  { %784 = vmatprep.subr.mxu0 %v67_v19  ;;  %874 = vmatmul.mubr.msk.f32.vlgmr.msra.gmra.mxu1 %vm104_vm1, %v100_v32  ;;  %v43_v50 = vld [vmem:[%s1516_s2 + $0x8] sm:$0xff]  ;;  %v58_v51 = vld [vmem:[%s1516_s2 + $0x80] sm:$0xff]  ;;  %v258_v52 = vld [vmem:[%s1518_s4 + $0x50] sm:$0xff] }
   0xf   :  { %785 = vmatpush3.msra.mxu0 %v51_v21  ;;  %876 = vmatprep.subr.mxu1 %v992_v3  ;;  %v42_v53 = vld [vmem:[%s1516_s2] sm:$0xff]  ;;  %v356_v54 = vld [vmem:[%s1519_s6 + $0x78] sm:$0xff]  ;;  %v257_v55 = vld [vmem:[%s1518_s4 + $0x48] sm:$0xff] }
  0x10   :  { %786 = vmatprep.subr.mxu0 %v66_v24  ;;  %877 = vmatpush3.msra.mxu1 %v263_v37  ;;  %v355_v56 = vld [vmem:[%s1519_s6 + $0x70] sm:$0xff]  ;;  %v256_v57 = vld [vmem:[%s1518_s4 + $0x40] sm:$0xff]  ;;  %v354_v58 = vld [vmem:[%s1519_s6 + $0x68] sm:$0xff] }
  0x11   :  { %787 = vmatpush3.msra.mxu0 %v50_v28  ;;  %878 = vmatprep.subr.mxu1 %v992_v3  ;;  %v255_v59 = vld [vmem:[%s1518_s4 + $0x38] sm:$0xff]  ;;  %v353_v60 = vld [vmem:[%s1519_s6 + $0x60] sm:$0xff]  ;;  %v254_v61 = vld [vmem:[%s1518_s4 + $0x30] sm:$0xff] }
  0x12   :  { %788 = vmatprep.subr.mxu0 %v65_v29  ;;  %879 = vmatpush3.msra.mxu1 %v262_v40  ;;  %v352_v62 = vld [vmem:[%s1519_s6 + $0x58] sm:$0xff]  ;;  %v351_v63 = vld [vmem:[%s1519_s6 + $0x50] sm:$0xff]  ;;  %v350_v0 = vld [vmem:[%s1519_s6 + $0x48] sm:$0xff] }
  0x13   :  { %789 = vmatpush3.msra.mxu0 %v49_v31  ;;  %880 = vmatprep.subr.mxu1 %v992_v3  ;;  %v349_v1 = vld [vmem:[%s1519_s6 + $0x40] sm:$0xff]  ;;  %v348_v2 = vld [vmem:[%s1519_s6 + $0x38] sm:$0xff]  ;;  %v347_v4 = vld [vmem:[%s1519_s6 + $0x30] sm:$0xff] }
  0x14   :  { %790 = vmatprep.subr.mxu0 %v64_v34  ;;  %881 = vmatpush3.msra.mxu1 %v261_v43  ;;  %v253_v5 = vld [vmem:[%s1518_s4 + $0x28] sm:$0xff]  ;;  %v252_v7 = vld [vmem:[%s1518_s4 + $0x20] sm:$0xff]  ;;  %v251_v9 = vld [vmem:[%s1518_s4 + $0x18] sm:$0xff] }
  0x15   :  { %791 = vmatpush3.msra.mxu0 %v48_v35  ;;  %882 = vmatprep.subr.mxu1 %v992_v3  ;;  %v346_v6 = vld [vmem:[%s1519_s6 + $0x28] sm:$0xff]  ;;  %v345_v8 = vld [vmem:[%s1519_s6 + $0x20] sm:$0xff]  ;;  %v344_v10 = vld [vmem:[%s1519_s6 + $0x18] sm:$0xff] }
  0x16   :  { %792 = vmatprep.subr.mxu0 %v63_v36  ;;  %883 = vmatpush3.msra.mxu1 %v260_v46  ;;  %v250_v11 = vld [vmem:[%s1518_s4 + $0x10] sm:$0xff]  ;;  %v249_v14 = vld [vmem:[%s1518_s4 + $0x8] sm:$0xff]  ;;  %v248_v16 = vld [vmem:[%s1518_s4] sm:$0xff] }
  0x17   :  { %793 = vmatpush3.msra.mxu0 %v47_v38  ;;  %884 = vmatprep.subr.mxu1 %v992_v3  ;;  %v343_v13 = vld [vmem:[%s1519_s6 + $0x10] sm:$0xff]  ;;  %v342_v15 = vld [vmem:[%s1519_s6 + $0x8] sm:$0xff]  ;;  %v341_v18 = vld [vmem:[%s1519_s6] sm:$0xff] }
  0x18   :  { %794 = vmatprep.subr.mxu0 %v62_v39  ;;  %885 = vmatpush3.msra.mxu1 %v259_v49  ;;  %v765_v23 = vld [vmem:[%s1520_s3] ss:$0 sm:$0xff]  ;;  %v572_v29 = vld [vmem:[%s1522_s10 + $0x170] sm:$0xff]  ;;  %v573_v30 = vld [vmem:[%s1522_s10 + $0x178] sm:$0xff] }
  0x19   :  { %795 = vmatpush3.msra.mxu0 %v46_v41  ;;  %886 = vmatprep.subr.mxu1 %v992_v3  ;;  %v439_v28 = vld [vmem:[%s1521_s8] sm:$0xf]  ;;  %v567_v32 = vld [vmem:[%s1522_s10 + $0x148] sm:$0xff]  ;;  %v564_v33 = vld [vmem:[%s1522_s10 + $0x130] sm:$0xff] }
  0x1a   :  { %796 = vmatprep.subr.mxu0 %v61_v42  ;;  %887 = vmatpush3.msra.mxu1 %v258_v52  ;;  %v570_v31 = vld [vmem:[%s1522_s10 + $0x160] sm:$0xff]  ;;  %v561_v34 = vld [vmem:[%s1522_s10 + $0x118] sm:$0xff]  ;;  %v555_v36 = vld [vmem:[%s1522_s10 + $0xe8] sm:$0xff] }
  0x1b   :  { %797 = vmatpush3.msra.mxu0 %v45_v44  ;;  %888 = vmatprep.subr.mxu1 %v992_v3  ;;  %v558_v35 = vld [vmem:[%s1522_s10 + $0x100] sm:$0xff]  ;;  %v552_v37 = vld [vmem:[%s1522_s10 + $0xd0] sm:$0xff]  ;;  %v549_v38 = vld [vmem:[%s1522_s10 + $0xb8] sm:$0xff] }
  0x1c   :  { %798 = vmatprep.subr.mxu0 %v60_v45  ;;  %889 = vmatpush3.msra.mxu1 %v257_v55  ;;  %v546_v39 = vld [vmem:[%s1522_s10 + $0xa0] sm:$0xff]  ;;  %v543_v40 = vld [vmem:[%s1522_s10 + $0x88] sm:$0xff]  ;;  %v540_v41 = vld [vmem:[%s1522_s10 + $0x70] sm:$0xff] }
  0x1d   :  { %799 = vmatpush3.msra.mxu0 %v44_v47  ;;  %890 = vmatprep.subr.mxu1 %v992_v3  ;;  %v537_v42 = vld [vmem:[%s1522_s10 + $0x58] sm:$0xff]  ;;  %v768_v43 = vld [vmem:[%s1523_s7] ss:$0 sm:$0xff]  ;;  %vm757_vm6 = vmor %vm756_vm5, %vm755_vm4 }
  0x1e   :  { %800 = vmatprep.subr.mxu0 %v59_v48  ;;  %891 = vmatpush3.msra.mxu1 %v256_v57  ;;  %v569_v57 = vld [vmem:[%s1522_s10 + $0x158] sm:$0xff]  ;;  %vm759_vm8 = vmor %vm758_vm7, %vm757_vm6 }
  0x1f   :  { %801 = vmatpush3.msra.mxu0 %v43_v50  ;;  %892 = vmatprep.subr.mxu1 %v992_v3  ;;  %v767_v50 = vld [vmem:[%s1524_s5] ss:$0 sm:$0xff] }
  0x20   :  { %802 = vmatprep.subr.mxu0 %v58_v51  ;;  %893 = vmatpush3.msra.mxu1 %v255_v59  ;;  %v436_v51 = vld [vmem:[%s1525_s1] sm:$0x3] }
  0x21   :  { %803 = vmatpush3.msra.mxu0 %v42_v53  ;;  %894 = vmatprep.subr.mxu1 %v992_v3  ;;  %v566_v59 = vld [vmem:[%s1522_s10 + $0x140] sm:$0xff] }
  0x22   :  { %172 = vmatmul.mubr.f32.vlgmr.msra.gmra.mxu0 %v1124_v26  ;;  %911 = vmatprep.subr.mxu0 %v992_v3 }
  0x23   :  { %912 = vmatpush3.msra.mxu0 %v356_v54  ;;  %895 = vmatpush3.msra.mxu1 %v254_v61  ;;  %v563_v61 = vld [vmem:[%s1522_s10 + $0x128] sm:$0xff] }
  0x24   :  { %913 = vmatprep.subr.mxu0 %v992_v3  ;;  %896 = vmatprep.subr.mxu1 %v992_v3 }
  0x25   :  { %914 = vmatpush3.msra.mxu0 %v355_v56  ;;  %908 = vmatprep.mubr.msk.f32.mxu1 %vm994_vm0, %v992_v3  ;;  %v571_v56 = vld [vmem:[%s1522_s10 + $0x168] sm:$0xff] }
  0x26   :  { %915 = vmatprep.subr.mxu0 %v992_v3  ;;  %943 = vmatprep.mubr.msk.f32.mxu0 %vm994_vm0, %v992_v3 }
  0x27   :  { %916 = vmatpush3.msra.mxu0 %v354_v58  ;;  %897 = vmatpush3.msra.mxu1 %v253_v5  ;;  %v568_v58 = vld [vmem:[%s1522_s10 + $0x150] sm:$0xff]  ;;  %v553_v5 = vld [vmem:[%s1522_s10 + $0xd8] sm:$0xff] }
  0x28   :  { %917 = vmatprep.subr.mxu0 %v992_v3  ;;  %898 = vmatprep.subr.mxu1 %v992_v3 }
  0x29   :  { %918 = vmatpush3.msra.mxu0 %v353_v60  ;;  %899 = vmatpush3.msra.mxu1 %v252_v7  ;;  %v565_v60 = vld [vmem:[%s1522_s10 + $0x138] sm:$0xff]  ;;  %v550_v7 = vld [vmem:[%s1522_s10 + $0xc0] sm:$0xff] }
  0x2a   :  { %919 = vmatprep.subr.mxu0 %v992_v3  ;;  %900 = vmatprep.subr.mxu1 %v992_v3 }
  0x2b   :  { %920 = vmatpush3.msra.mxu0 %v352_v62  ;;  %901 = vmatpush3.msra.mxu1 %v251_v9  ;;  %v562_v62 = vld [vmem:[%s1522_s10 + $0x120] sm:$0xff]  ;;  %v547_v9 = vld [vmem:[%s1522_s10 + $0xa8] sm:$0xff] }
  0x2c   :  { %921 = vmatprep.subr.mxu0 %v992_v3  ;;  %902 = vmatprep.subr.mxu1 %v992_v3 }
  0x2d   :  { %922 = vmatpush3.msra.mxu0 %v351_v63  ;;  %903 = vmatpush3.msra.mxu1 %v250_v11  ;;  %v560_v63 = vld [vmem:[%s1522_s10 + $0x110] sm:$0xff] }
  0x2e   :  { %923 = vmatprep.subr.mxu0 %v992_v3  ;;  %904 = vmatprep.subr.mxu1 %v992_v3  ;;  %v544_v11 = vld [vmem:[%s1522_s10 + $0x90] sm:$0xff] }
  0x2f   :  { %924 = vmatpush3.msra.mxu0 %v350_v0  ;;  %905 = vmatpush3.msra.mxu1 %v249_v14  ;;  %v559_v0 = vld [vmem:[%s1522_s10 + $0x108] sm:$0xff]  ;;  %v541_v14 = vld [vmem:[%s1522_s10 + $0x78] sm:$0xff] }
  0x30   :  { %925 = vmatprep.subr.mxu0 %v992_v3  ;;  %906 = vmatprep.subr.mxu1 %v992_v3 }
  0x31   :  { %926 = vmatpush3.msra.mxu0 %v349_v1  ;;  %907 = vmatpush3.msra.mxu1 %v248_v16  ;;  %v557_v1 = vld [vmem:[%s1522_s10 + $0xf8] sm:$0xff]  ;;  %v538_v16 = vld [vmem:[%s1522_s10 + $0x60] sm:$0xff] }
  0x32   :  { %927 = vmatprep.subr.mxu0 %v992_v3  ;;  %946 = vmatprep.subr.mxu1 %v992_v3 }
  0x33   :  { %928 = vmatpush3.msra.mxu0 %v348_v2  ;;  %v556_v2 = vld [vmem:[%s1522_s10 + $0xf0] sm:$0xff] }
  0x34   :  { %929 = vmatprep.subr.mxu0 %v992_v3 }
  0x35   :  { %930 = vmatpush3.msra.mxu0 %v347_v4  ;;  %v554_v4 = vld [vmem:[%s1522_s10 + $0xe0] sm:$0xff] }
  0x36   :  { %931 = vmatprep.subr.mxu0 %v992_v3 }
  0x37   :  { %932 = vmatpush3.msra.mxu0 %v346_v6  ;;  %v551_v6 = vld [vmem:[%s1522_s10 + $0xc8] sm:$0xff] }
  0x38   :  { %933 = vmatprep.subr.mxu0 %v992_v3 }
  0x39   :  { %934 = vmatpush3.msra.mxu0 %v345_v8  ;;  %v548_v8 = vld [vmem:[%s1522_s10 + $0xb0] sm:$0xff] }
  0x3a   :  { %935 = vmatprep.subr.mxu0 %v992_v3 }
  0x3b   :  { %936 = vmatpush3.msra.mxu0 %v344_v10  ;;  %v545_v10 = vld [vmem:[%s1522_s10 + $0x98] sm:$0xff] }
  0x3c   :  { %937 = vmatprep.subr.mxu0 %v992_v3 }
  0x3d   :  { %938 = vmatpush3.msra.mxu0 %v343_v13  ;;  %v542_v13 = vld [vmem:[%s1522_s10 + $0x80] sm:$0xff] }
  0x3e   :  { %939 = vmatprep.subr.mxu0 %v992_v3 }
  0x3f   :  { %940 = vmatpush3.msra.mxu0 %v342_v15  ;;  %v539_v15 = vld [vmem:[%s1522_s10 + $0x68] sm:$0xff] }
  0x40   :  { %941 = vmatprep.subr.mxu0 %v992_v3 }
  0x41   :  { %942 = vmatpush3.msra.mxu0 %v341_v18  ;;  %v536_v18 = vld [vmem:[%s1522_s10 + $0x50] sm:$0xff] }
  0x42   :  { %951 = vmatprep.subr.mxu0 %v992_v3 }
  0xce   :  { %v243_v19 = vpop.f32.mrf.mxu1 }
  0xd0   :  { %v875_v20 = vpop.f32.mrf.mxu1 }
  0xd1   :  { %v533_v20 = vld [vmem:[%s1522_s10 + $0x38] sm:$0xff] }
  0xe2   :  { %v804_v21 = vpop.f32.mrf.mxu0 }
  0xe4   :  { %v805_v22 = vpop.f32.mrf.mxu0 }
  0xe5   :  { %v806_v24 = vadd.f32 %v805_v22, %v804_v21  ;;  %v532_v21 = vld [vmem:[%s1522_s10 + $0x30] sm:$0xff]  ;;  %v534_v22 = vld [vmem:[%s1522_s10 + $0x40] sm:$0xff] }
  0xe7   :  { %v174_v25 = vadd.f32 %v806_v24, %v765_v23  ;;  %v530_v23 = vld [vmem:[%s1522_s10 + $0x20] sm:$0xff]  ;;  %v529_v24 = vld [vmem:[%s1522_s10 + $0x18] sm:$0xff] }
  0xe9   :  { %v244_v26 = vadd.f32 %v243_v19, %v174_v25  ;;  %v535_v19 = vld [vmem:[%s1522_s10 + $0x48] sm:$0xff] }
  0xea   :  { %v531_v25 = vld [vmem:[%s1522_s10 + $0x28] sm:$0xff] }
  0xeb   :  { %v247_v27 = vmax.f32 %v244_v26, 0.0  ;;  %v527_v26 = vld [vmem:[%s1522_s10 + $0x8] sm:$0xff] }
  0xed   :  { %909 = vmatmul.mubr.f32.vlgmr.msra.gmra.mxu1 %v247_v27  ;;  %944 = vmatmul.mubr.f32.vlgmr.msra.gmra.mxu0 %v247_v27  ;;  %v526_v27 = vld [vmem:[%s1522_s10] sm:$0xff] }
  0xee   :  { %948 = vmatprep.mubr.msk.f32.mxu1 %vm994_vm0, %v992_v3  ;;  %983 = vmatprep.mubr.msk.f32.mxu0 %vm994_vm0, %v992_v3 }
  0xef   :  { %947 = vmatpush3.msk.msra.mxu1 %vm451_vm2, %v439_v28  ;;  %952 = vmatpush3.msra.mxu0 %v573_v30  ;;  %v528_v28 = vld [vmem:[%s1522_s10 + $0x10] sm:$0xff] }
  0xf0   :  { %591 = vmatprep.subr.mxu1 %v572_v29  ;;  %953 = vmatprep.subr.mxu0 %v992_v3  ;;  %v769_v29 = vld [vmem:[%s1526_s9] ss:$0 sm:$0xff] }
  0xf1   :  { %954 = vmatpush3.msra.mxu0 %v570_v31 }
  0xf2   :  { %955 = vmatprep.subr.mxu0 %v992_v3 }
  0xf3   :  { %956 = vmatpush3.msra.mxu0 %v567_v32 }
  0xf4   :  { %957 = vmatprep.subr.mxu0 %v992_v3 }
  0xf5   :  { %958 = vmatpush3.msra.mxu0 %v564_v33 }
  0xf6   :  { %959 = vmatprep.subr.mxu0 %v992_v3 }
  0xf7   :  { %960 = vmatpush3.msra.mxu0 %v561_v34  ;;  %v586_v34 = vsub.s32 2, %v1084_v12 }
  0xf8   :  { %961 = vmatprep.subr.mxu0 %v992_v3 }
  0xf9   :  { %962 = vmatpush3.msra.mxu0 %v558_v35  ;;  %v574_v35 = vld [vmem:[%s1527_s11] sm:$0x7] }
  0xfa   :  { %963 = vmatprep.subr.mxu0 %v992_v3 }
  0xfb   :  { %964 = vmatpush3.msra.mxu0 %v555_v36  ;;  %v582_v36 = vsub.s32 1, %v1084_v12 }
  0xfc   :  { %965 = vmatprep.subr.mxu0 %v992_v3 }
  0xfd   :  { %966 = vmatpush3.msra.mxu0 %v552_v37 }
  0xfe   :  { %967 = vmatprep.subr.mxu0 %v992_v3 }
  0xff   :  { %968 = vmatpush3.msra.mxu0 %v549_v38  ;;  %v587_v38 = vrot.slane %v574_v35, %v586_v34 }
 0x100   :  { %969 = vmatprep.subr.mxu0 %v992_v3 }
 0x101   :  { %970 = vmatpush3.msra.mxu0 %v546_v39  ;;  %v583_v39 = vrot.slane %v574_v35, %v582_v36 }
 0x102   :  { %971 = vmatprep.subr.mxu0 %v992_v3 }
 0x103   :  { %972 = vmatpush3.msra.mxu0 %v543_v40 }
 0x104   :  { %973 = vmatprep.subr.mxu0 %v992_v3 }
 0x105   :  { %974 = vmatpush3.msra.mxu0 %v540_v41 }
 0x106   :  { %975 = vmatprep.subr.mxu0 %v992_v3 }
 0x107   :  { %976 = vmatpush3.msra.mxu0 %v537_v42 }
 0x108   :  { %977 = vmatprep.subr.mxu0 %v992_v3 }
 0x109   :  { %978 = vmatpush3.msra.mxu0 %v534_v22 }
 0x10a   :  { %979 = vmatprep.subr.mxu0 %v992_v3 }
 0x10b   :  { %980 = vmatpush3.msra.mxu0 %v531_v25 }
 0x10c   :  { %981 = vmatprep.subr.mxu0 %v992_v3 }
 0x10d   :  { %982 = vmatpush3.msra.mxu0 %v528_v28 }
 0x1ad   :  { %v337_v44 = vpop.f32.mrf.mxu1  ;;  %v430_v45 = vpop.f32.mrf.mxu0 }
 0x1ae   :  { %v431_v46 = vadd.f32 %v768_v43, %v430_v45  ;;  %v338_v53 = vadd.f32 %v767_v50, %v337_v44 }
 0x1af   :  { %v910_v47 = vpop.f32.mrf.mxu1  ;;  %v945_v48 = vpop.f32.mrf.mxu0 }
 0x1b0   :  { %v434_v49 = vmul.f32 1.442695, %v431_v46 }
 0x1b2   :  { %990 = vpow2.f32 %v434_v49 }
 0x1bf   :  { %v991_v52 = vpop.eup %990 }
 0x1c0   :  { %v437_v54 = vmul.f32 %v991_v52, %v436_v51 }
 0x1c2   :  { %v438_v55 = vadd.f32 %v437_v54, %v338_v53 }
 0x1c4   :  { %949 = vmatmul.mubr.msk.f32.vlgmr.msra.gmra.mxu1 %vm447_vm3, %v438_v55 }
 0x1c5   :  { %592 = vmatpush1.msra.mxu1 %v571_v56  ;;  %655 = vmatprep.mubr.f32.mxu1 %v992_v3  ;;  %v578_v3 = vsub.s32 0, %v1084_v12 }
 0x1c6   :  { %593 = vmatprep.subr.mxu1 %v569_v57 }
 0x1c7   :  { %594 = vmatpush1.msra.mxu1 %v568_v58  ;;  %v579_v37 = vrot.slane %v574_v35, %v578_v3 }
 0x1c8   :  { %595 = vmatprep.subr.mxu1 %v566_v59 }
 0x1c9   :  { %596 = vmatpush1.msra.mxu1 %v565_v60 }
 0x1ca   :  { %597 = vmatprep.subr.mxu1 %v563_v61 }
 0x1cb   :  { %598 = vmatpush1.msra.mxu1 %v562_v62 }
 0x1cc   :  { %599 = vmatprep.subr.mxu1 %v560_v63 }
 0x1cd   :  { %600 = vmatpush1.msra.mxu1 %v559_v0 }
 0x1ce   :  { %601 = vmatprep.subr.mxu1 %v557_v1 }
 0x1cf   :  { %602 = vmatpush1.msra.mxu1 %v556_v2 }
 0x1d0   :  { %603 = vmatprep.subr.mxu1 %v554_v4 }
 0x1d1   :  { %604 = vmatpush1.msra.mxu1 %v553_v5 }
 0x1d2   :  { %605 = vmatprep.subr.mxu1 %v551_v6 }
 0x1d3   :  { %606 = vmatpush1.msra.mxu1 %v550_v7 }
 0x1d4   :  { %607 = vmatprep.subr.mxu1 %v548_v8 }
 0x1d5   :  { %608 = vmatpush1.msra.mxu1 %v547_v9 }
 0x1d6   :  { %609 = vmatprep.subr.mxu1 %v545_v10 }
 0x1d7   :  { %610 = vmatpush1.msra.mxu1 %v544_v11 }
 0x1d8   :  { %611 = vmatprep.subr.mxu1 %v542_v13 }
 0x1d9   :  { %612 = vmatpush1.msra.mxu1 %v541_v14 }
 0x1da   :  { %613 = vmatprep.subr.mxu1 %v539_v15 }
 0x1db   :  { %614 = vmatpush1.msra.mxu1 %v538_v16 }
 0x1dc   :  { %615 = vmatprep.subr.mxu1 %v536_v18 }
 0x1dd   :  { %616 = vmatpush1.msra.mxu1 %v535_v19 }
 0x1de   :  { %617 = vmatprep.subr.mxu1 %v533_v20 }
 0x1df   :  { %618 = vmatpush1.msra.mxu1 %v532_v21 }
 0x1e0   :  { %619 = vmatprep.subr.mxu1 %v530_v23 }
 0x1e1   :  { %620 = vmatpush1.msra.mxu1 %v529_v24 }
 0x1e2   :  { %621 = vmatprep.subr.mxu1 %v527_v26 }
 0x1e3   :  { %622 = vmatpush1.msra.mxu1 %v526_v27 }
 0x284   :  { %v521_v30 = vpop.f32.mrf.mxu1 }
 0x285   :  { %v522_v31 = vadd.f32 %v769_v29, %v521_v30 }
 0x286   :  { %v950_v32 = vpop.f32.mrf.mxu1 }
 0x287   :  { %v525_v33 = vmax.f32 %v522_v31, 0.0 }
 0x289   :  { %656 = vmatmul.mubr.f32.vlgmr.msra.gmra.mxu1 %v525_v33  ;;  %984 = vmatmul.mubr.f32.vlgmr.msra.gmra.mxu0 %v525_v33 }
 0x349   :  { %v657_v40 = vpop.f32.mrf.mxu1  ;;  %v728_v41 = vpop.f32.mrf.mxu0 }
 0x34a   :  { %v658_v42 = vadd.f32 %v657_v40, %v579_v37  ;;  %v729_v43 = vadd.f32 %v728_v41, %v587_v38 }
 0x34b   :  { %v659_v44 = vpop.f32.mrf.mxu1  ;;  %v985_v45 = vpop.f32.mrf.mxu0 }
 0x34c   :  { %v660_v46 = vadd.f32 %v659_v44, %v583_v39  ;;  %v732_v47 = vmax.f32 %v658_v42, 0.0  ;;  %v734_v48 = vmax.f32 %v729_v43, 0.0 }
 0x34e   :  { %v733_v49 = vmax.f32 %v660_v46, 0.0  ;;  %v752_v12 = vrot.slane %v734_v48, %v1099_v17 }
 0x350   :  { %v738_v50 = vcombine.low %v732_v47, %v733_v49 }
 0x352   :  { %v745_v51 = vrot.slane %v738_v50, %v1099_v17 }
 0x354   :  { %v753_v52 = vcombine.low %v745_v51, %v752_v12 }
 0x356   :  { %760 = vst.msk [vmem:[%s1528_s12] sm:$0x3f] %vm759_vm8, %v753_v52 }

// kernel: vae_forward.11
= control target key start
LH: loop header
LB: loop body
LE: loop exit
PB: predicated region body
PF: predicated region fallthrough
CT: control target
= control target key end

     0   :  { %v432_v1 = vmov 0.0   ;;  %vm433_vm0 = vmmov 0   ;;  %v434_v3 = vmov 0   ;;  %vm196_vm1 = vcmask 261120   ;;  %s558_s1 = inlined_call_operand.vmem [shape: bf16[288,98], index: 1, kind: input, shape index: {}]   ;;  %s559_s0 = inlined_call_operand.vmem [shape: bf16[16,288], index: 0, kind: input, shape index: {}]   ;;  %s560_s2 = inlined_call_operand.vmem [shape: f32[16,1], index: 2, kind: input, shape index: {}]   ;;  %s561_s3 = inlined_call_operand.vmem [shape: f32[16,1], index: 3, kind: input, shape index: {}]   ;;  %s562_s4 = inlined_call_operand.vmem [shape: f32[16,1], index: 4, kind: input, shape index: {}]   ;;  %s563_s5 = inlined_call_operand.vmem [shape: f32[16,98], index: 5, kind: output, shape index: {}]  }
   0x1   :  { %v406_v0 = vld [vmem:[%s558_s1 + $0x78] sm:$0xff]   ;;  %393 = vmatprep.subr.bf16.mxu1 %v432_v1  ;;  %397 = vmatprep.mubr.msk.bf16.mxu1 %vm433_vm0, %v432_v1  ;;  %v408_v4 = vld [vmem:[%s558_s1 + $0x70] sm:$0xff]   ;;  %v410_v6 = vld [vmem:[%s558_s1 + $0x68] sm:$0xff]   ;;  %vm282_vm2 = vcmask 801792  }
   0x2   :  { %v407_v2 = vld [vmem:[%s558_s1 + $0x38] sm:$0xff]   ;;  %404 = vset.pattern.permute.xlu0 %v434_v3  ;;  %405 = vset.pattern.permute.xlu1 %v434_v3  ;;  %v409_v5 = vld [vmem:[%s558_s1 + $0x30] sm:$0xff]   ;;  %v411_v7 = vld [vmem:[%s558_s1 + $0x28] sm:$0xff]  }
   0x3   :  { %368 = vmatprep.subr.bf16.mxu0 %v406_v0  ;;  %v412_v8 = vld [vmem:[%s558_s1 + $0x60] sm:$0xff]   ;;  %v414_v10 = vld [vmem:[%s558_s1 + $0x58] sm:$0xff]   ;;  %v420_v11 = vld [vmem:[%s558_s1 + $0x88] sm:$0xff]  }
   0x4   :  { %369 = vmatpush3.bf16.msra.mxu0 %v407_v2  ;;  %v413_v9 = vld [vmem:[%s558_s1 + $0x20] sm:$0xff]   ;;  %v415_v12 = vld [vmem:[%s558_s1 + $0x18] sm:$0xff]   ;;  %v416_v13 = vld [vmem:[%s558_s1 + $0x50] sm:$0xff]   ;;  %394 = vmatpush3.bf16.msra.mxu1 %v420_v11 }
   0x5   :  { %370 = vmatprep.subr.bf16.mxu0 %v408_v4  ;;  %395 = vmatprep.subr.bf16.mxu1 %v432_v1  ;;  %v423_v14 = vld [vmem:[%s558_s1 + $0x80] sm:$0xff]   ;;  %v417_v15 = vld [vmem:[%s558_s1 + $0x10] sm:$0xff]   ;;  %v418_v17 = vld [vmem:[%s558_s1 + $0x48] sm:$0xff]  }
   0x6   :  { %v426_v16 = vld [vmem:[%s559_s0 + $0x4] ss:$12 sps:$4 sm:$0xff]   ;;  %v427_v18 = vld [vmem:[%s559_s0 + $0x8] ss:$12 sps:$4 sm:$0xff]   ;;  %v424_v24 = vld [vmem:[%s559_s0] ss:$12 sps:$4 sm:$0xff]  }
   0x7   :  { %v61_v19 = vld [vmem:[%s560_s2] sm:$0xff]  ;;  %232 = vmatprep.mubr.bf16.mxu0 %v426_v16  ;;  %v62_v20 = vld [vmem:[%s560_s2 + $0x8] sm:$0xff] }
   0x8   :  { %371 = vmatpush3.bf16.msra.mxu0 %v409_v5  ;;  %396 = vmatpush3.bf16.msra.mxu1 %v423_v14  ;;  %v419_v21 = vld [vmem:[%s558_s1 + $0x8] sm:$0xff]   ;;  %v421_v22 = vld [vmem:[%s558_s1 + $0x40] sm:$0xff]  }
   0x9   :  { %372 = vmatprep.subr.bf16.mxu0 %v410_v6  ;;  %65 = vperm.xlu0 %404, %v61_v19   ;;  %v422_v23 = vld [vmem:[%s558_s1] sm:$0xff]   ;;  %v311_v44 = vld [vmem:[%s561_s3 + $0x8] sm:$0xff] }
   0xa   :  { %v310_v43 = vld [vmem:[%s561_s3] sm:$0xff]  ;;  %v325_v56 = vld [vmem:[%s562_s4 + $0x8] sm:$0xff] }
   0xb   :  { %398 = vmatmul.mubr.msk.bf16.vlgmr.msra.gmra.mxu1 %vm196_vm1, %v427_v18  ;;  %v324_v45 = vld [vmem:[%s562_s4] sm:$0xff] }
   0xc   :  { %373 = vmatpush3.bf16.msra.mxu0 %v411_v7 }
   0xd   :  { %374 = vmatprep.subr.bf16.mxu0 %v412_v8  ;;  %70 = vperm.xlu0 %404, %v62_v20  }
  0x10   :  { %375 = vmatpush3.bf16.msra.mxu0 %v413_v9 }
  0x11   :  { %376 = vmatprep.subr.bf16.mxu0 %v414_v10 }
  0x14   :  { %377 = vmatpush3.bf16.msra.mxu0 %v415_v12 }
  0x15   :  { %378 = vmatprep.subr.bf16.mxu0 %v416_v13 }
  0x18   :  { %379 = vmatpush3.bf16.msra.mxu0 %v417_v15 }
  0x19   :  { %380 = vmatprep.subr.bf16.mxu0 %v418_v17 }
  0x1c   :  { %381 = vmatpush3.bf16.msra.mxu0 %v419_v21 }
  0x1d   :  { %382 = vmatprep.subr.bf16.mxu0 %v421_v22 }
  0x20   :  { %383 = vmatpush3.bf16.msra.mxu0 %v422_v23 }
  0x23   :  { %233 = vmatmul.mubr.bf16.vlgmr.msra.gmra.mxu0 %v424_v24 }
  0x84   :  { %v66_v30 = vpop.permute.xlu0 %65 }
  0x88   :  { %v71_v38 = vpop.permute.xlu0 %70 }
  0xcb   :  { %v275_v25 = vpop.f32.mrf.mxu1 }
  0xcd   :  { %v399_v26 = vpop.f32.mrf.mxu1 }
  0xcf   :  { %v278_v27 = vpop.f32.mrf.mxu1 }
  0xd1   :  { %v400_v28 = vpop.f32.mrf.mxu1 }
  0xe3   :  { %v384_v29 = vpop.f32.mrf.mxu0 }
  0xe5   :  { %v385_v31 = vpop.f32.mrf.mxu0 }
  0xe6   :  { %v386_v32 = vadd.f32 %v385_v31, %v384_v29 }
  0xe7   :  { %v387_v33 = vpop.f32.mrf.mxu0 }
  0xe8   :  { %v235_v34 = vadd.f32 %v386_v32, %v66_v30 }
  0xe9   :  { %v388_v35 = vpop.f32.mrf.mxu0 }
  0xea   :  { %v389_v36 = vadd.f32 %v388_v35, %v387_v33  ;;  %v276_v37 = vadd.f32 %v275_v25, %v235_v34 }
  0xec   :  { %v238_v39 = vadd.f32 %v389_v36, %v71_v38  ;;  %v283_v40 = vsel %vm282_vm2, %v276_v37, 0.0 }
  0xed   :  { %284 = vadd.xlane.f32.xlu1 %v283_v40 }
  0xee   :  { %v279_v41 = vadd.f32 %v278_v27, %v238_v39 }
  0xf0   :  { %v286_v42 = vsel %vm282_vm2, %v279_v41, 0.0 }
  0xf1   :  { %287 = vadd.xlane.f32.xlu1 %v286_v42 }
 0x102   :  { %314 = vperm.xlu1 %405, %v310_v43  }
 0x106   :  { %319 = vperm.xlu1 %405, %v311_v44  }
 0x10a   :  { %328 = vperm.xlu1 %405, %v324_v45  }
 0x176   :  { %v285_v46 = vpop.xlane.xlu1 %284 }
 0x177   :  { %v290_v47 = vmul.f32 0.010204081, %v285_v46 }
 0x179   :  { %v292_v48 = vsub.f32 %v276_v37, %v290_v47 }
 0x17a   :  { %v288_v49 = vpop.xlane.xlu1 %287 }
 0x17b   :  { %v291_v50 = vmul.f32 0.010204081, %v288_v49  ;;  %v294_v51 = vmul.f32 %v292_v48, %v292_v48 }
 0x17d   :  { %v293_v52 = vsub.f32 %v279_v41, %v291_v50  ;;  %v296_v53 = vsel %vm282_vm2, %v294_v51, 0.0 }
 0x17e   :  { %297 = vadd.xlane.f32.xlu0 %v296_v53  ;;  %v315_v57 = vpop.permute.xlu1 %314 }
 0x17f   :  { %v295_v54 = vmul.f32 %v293_v52, %v293_v52 }
 0x181   :  { %v299_v55 = vsel %vm282_vm2, %v295_v54, 0.0 }
 0x182   :  { %300 = vadd.xlane.f32.xlu1 %v299_v55  ;;  %v320_v58 = vpop.permute.xlu1 %319 }
 0x186   :  { %v329_v59 = vpop.permute.xlu1 %328 }
 0x193   :  { %333 = vperm.xlu1 %405, %v325_v56  }
 0x207   :  { %v298_v60 = vpop.xlane.xlu0 %297 }
 0x208   :  { %v302_v61 = vmul.f32 0.010204081, %v298_v60 }
 0x20a   :  { %v304_v62 = vadd.f32 1e-05, %v302_v61 }
 0x20b   :  { %v301_v63 = vpop.xlane.xlu1 %300 }
 0x20c   :  { %428 = vrsqrt.f32 %v304_v62  ;;  %v303_v0 = vmul.f32 0.010204081, %v301_v63 }
 0x20e   :  { %v305_v1 = vadd.f32 1e-05, %v303_v0 }
 0x20f   :  { %v334_v10 = vpop.permute.xlu1 %333 }
 0x210   :  { %430 = vrsqrt.f32 %v305_v1 }
 0x219   :  { %v429_v2 = vpop.eup %428 }
 0x21a   :  { %v308_v3 = vmul.f32 %v429_v2, %v292_v48 }
 0x21c   :  { %v322_v4 = vmul.f32 %v315_v57, %v308_v3 }
 0x21d   :  { %v431_v5 = vpop.eup %430 }
 0x21e   :  { %v309_v6 = vmul.f32 %v431_v5, %v293_v52  ;;  %v336_v7 = vadd.f32 %v329_v59, %v322_v4 }
 0x220   :  { %v323_v8 = vmul.f32 %v320_v58, %v309_v6  ;;  %v338_v9 = vmax.f32 %v336_v7, 0.0 }
 0x222   :  { %340 = vst.msk [vmem:[%s563_s5] sm:$0xff] %vm282_vm2, %v338_v9  ;;  %v337_v11 = vadd.f32 %v334_v10, %v323_v8 }
 0x224   :  { %v339_v12 = vmax.f32 %v337_v11, 0.0 }
 0x226   :  { %341 = vst.msk [vmem:[%s563_s5 + $0x8] sm:$0xff] %vm282_vm2, %v339_v12 }

// kernel: vae_forward.12
= control target key start
LH: loop header
LB: loop body
LE: loop exit
PB: predicated region body
PF: predicated region fallthrough
CT: control target
= control target key end

     0   :  { %v499_v1 = vmov 0   ;;  %vm250_vm0 = vcmask 130048   ;;  %vm338_vm1 = vcmask 64512   ;;  %s665_s1 = inlined_call_operand.vmem [shape: bf16[144,392], index: 1, kind: input, shape index: {}]   ;;  %s666_s0 = inlined_call_operand.vmem [shape: bf16[8,144], index: 0, kind: input, shape index: {}]   ;;  %s667_s2 = inlined_call_operand.vmem [shape: f32[8,1], index: 2, kind: input, shape index: {}]   ;;  %s668_s3 = inlined_call_operand.vmem [shape: f32[8,1], index: 3, kind: input, shape index: {}]   ;;  %s669_s4 = inlined_call_operand.vmem [shape: f32[8,1], index: 4, kind: input, shape index: {}]   ;;  %s670_s5 = inlined_call_operand.vmem [shape: f32[8,392], index: 5, kind: output, shape index: {}]  }
   0x1   :  { %v441_v0 = vld [vmem:[%s665_s1 + $0xe4] ss:$16 sps:$4 sm:$0xff]   ;;  %439 = vset.pattern.permute.xlu0 %v499_v1  ;;  %440 = vset.pattern.permute.xlu1 %v499_v1  ;;  %v443_v2 = vld [vmem:[%s665_s1 + $0xec] ss:$16 sps:$4 sm:$0xff]   ;;  %v445_v3 = vld [vmem:[%s665_s1 + $0xe0] ss:$16 sps:$4 sm:$0xff]  }
   0x2   :  { %254 = vmatprep.subr.bf16.mxu0 %v441_v0  ;;  %v446_v4 = vld [vmem:[%s665_s1 + $0xe8] ss:$16 sps:$4 sm:$0xff]   ;;  %295 = vmatprep.subr.bf16.mxu1 %v443_v2  ;;  %v447_v5 = vld [vmem:[%s665_s1 + $0xc4] ss:$16 sps:$4 sm:$0xff]   ;;  %v449_v6 = vld [vmem:[%s665_s1 + $0xcc] ss:$16 sps:$4 sm:$0xff]  }
   0x3   :  { %255 = vmatpush1.bf16.msra.mxu0 %v445_v3  ;;  %296 = vmatpush1.bf16.msra.mxu1 %v446_v4  ;;  %v451_v7 = vld [vmem:[%s665_s1 + $0xc0] ss:$16 sps:$4 sm:$0xff]   ;;  %v452_v8 = vld [vmem:[%s665_s1 + $0xc8] ss:$16 sps:$4 sm:$0xff]   ;;  %v453_v9 = vld [vmem:[%s665_s1 + $0xa4] ss:$16 sps:$4 sm:$0xff]  }
   0x4   :  { %256 = vmatprep.subr.bf16.mxu0 %v447_v5  ;;  %297 = vmatprep.subr.bf16.mxu1 %v449_v6  ;;  %v455_v10 = vld [vmem:[%s665_s1 + $0xac] ss:$16 sps:$4 sm:$0xff]   ;;  %v457_v11 = vld [vmem:[%s665_s1 + $0xa0] ss:$16 sps:$4 sm:$0xff]   ;;  %v458_v12 = vld [vmem:[%s665_s1 + $0xa8] ss:$16 sps:$4 sm:$0xff]  }
   0x5   :  { %v459_v13 = vld [vmem:[%s665_s1 + $0x84] ss:$16 sps:$4 sm:$0xff]   ;;  %v461_v14 = vld [vmem:[%s665_s1 + $0x8c] ss:$16 sps:$4 sm:$0xff]   ;;  %v463_v15 = vld [vmem:[%s665_s1 + $0x80] ss:$16 sps:$4 sm:$0xff]  }
   0x6   :  { %v464_v16 = vld [vmem:[%s665_s1 + $0x88] ss:$16 sps:$4 sm:$0xff]   ;;  %v465_v17 = vld [vmem:[%s665_s1 + $0x64] ss:$16 sps:$4 sm:$0xff]   ;;  %v467_v18 = vld [vmem:[%s665_s1 + $0x6c] ss:$16 sps:$4 sm:$0xff]  }
   0x7   :  { %257 = vmatpush1.bf16.msra.mxu0 %v451_v7  ;;  %298 = vmatpush1.bf16.msra.mxu1 %v452_v8  ;;  %v469_v19 = vld [vmem:[%s665_s1 + $0x60] ss:$16 sps:$4 sm:$0xff]   ;;  %v470_v20 = vld [vmem:[%s665_s1 + $0x68] ss:$16 sps:$4 sm:$0xff]   ;;  %v471_v21 = vld [vmem:[%s665_s1 + $0x44] ss:$16 sps:$4 sm:$0xff]  }
   0x8   :  { %258 = vmatprep.subr.bf16.mxu0 %v453_v9  ;;  %299 = vmatprep.subr.bf16.mxu1 %v455_v10  ;;  %v473_v22 = vld [vmem:[%s665_s1 + $0x4c] ss:$16 sps:$4 sm:$0xff]   ;;  %v475_v23 = vld [vmem:[%s665_s1 + $0x40] ss:$16 sps:$4 sm:$0xff]   ;;  %v476_v24 = vld [vmem:[%s665_s1 + $0x48] ss:$16 sps:$4 sm:$0xff]  }
   0x9   :  { %v477_v25 = vld [vmem:[%s665_s1 + $0x24] ss:$16 sps:$4 sm:$0xff]   ;;  %v479_v26 = vld [vmem:[%s665_s1 + $0x2c] ss:$16 sps:$4 sm:$0xff]   ;;  %v481_v27 = vld [vmem:[%s665_s1 + $0x20] ss:$16 sps:$4 sm:$0xff]  }
   0xa   :  { %v482_v28 = vld [vmem:[%s665_s1 + $0x28] ss:$16 sps:$4 sm:$0xff]   ;;  %v21_v29 = vld [vmem:[%s666_s0] sm:$0xff]  ;;  %v485_v32 = vld [vmem:[%s665_s1 + $0xc] ss:$16 sps:$4 sm:$0xff]  }
   0xb   :  { %259 = vmatpush1.bf16.msra.mxu0 %v457_v11  ;;  %300 = vmatpush1.bf16.msra.mxu1 %v458_v12  ;;  %v58_v30 = vld [vmem:[%s667_s2] sm:$0xff]  ;;  %v399_v33 = vcombine.high %v21_v29, %v21_v29  ;;  %v488_v35 = vld [vmem:[%s665_s1 + $0x8] ss:$16 sps:$4 sm:$0xff]   ;;  %v491_v37 = vld [vmem:[%s665_s1 + $0x10c] ss:$16 sps:$4 sm:$0xff]   ;;  %v398_v40 = vcombine.low %v21_v29, %v21_v29 }
   0xc   :  { %260 = vmatprep.subr.bf16.mxu0 %v459_v13  ;;  %301 = vmatprep.subr.bf16.mxu1 %v461_v14  ;;  %v483_v31 = vld [vmem:[%s665_s1 + $0x4] ss:$16 sps:$4 sm:$0xff]   ;;  %v487_v34 = vld [vmem:[%s665_s1] ss:$16 sps:$4 sm:$0xff]   ;;  %v494_v39 = vld [vmem:[%s665_s1 + $0x108] ss:$16 sps:$4 sm:$0xff]  }
   0xd   :  { %61 = vperm.xlu0 %439, %v58_v30   ;;  %436 = vmatprep.mubr.msk.bf16.mxu0 %vm250_vm0, %v399_v33  ;;  %v489_v36 = vld [vmem:[%s665_s1 + $0x104] ss:$16 sps:$4 sm:$0xff]   ;;  %v493_v38 = vld [vmem:[%s665_s1 + $0x100] ss:$16 sps:$4 sm:$0xff]  }
   0xe   :  { %437 = vmatprep.mubr.msk.bf16.mxu1 %vm250_vm0, %v399_v33  ;;  %v366_v41 = vld [vmem:[%s668_s3] sm:$0xff] }
   0xf   :  { %261 = vmatpush1.bf16.msra.mxu0 %v463_v15  ;;  %302 = vmatpush1.bf16.msra.mxu1 %v464_v16  ;;  %v376_v9 = vld [vmem:[%s669_s4] sm:$0xff] }
  0x10   :  { %262 = vmatprep.subr.bf16.mxu0 %v465_v17  ;;  %303 = vmatprep.subr.bf16.mxu1 %v467_v18 }
  0x11   :  { %369 = vperm.xlu1 %440, %v366_v41  }
  0x13   :  { %263 = vmatpush1.bf16.msra.mxu0 %v469_v19  ;;  %304 = vmatpush1.bf16.msra.mxu1 %v470_v20 }
  0x14   :  { %264 = vmatprep.subr.bf16.mxu0 %v471_v21  ;;  %305 = vmatprep.subr.bf16.mxu1 %v473_v22 }
  0x17   :  { %265 = vmatpush1.bf16.msra.mxu0 %v475_v23  ;;  %306 = vmatpush1.bf16.msra.mxu1 %v476_v24 }
  0x18   :  { %266 = vmatprep.subr.bf16.mxu0 %v477_v25  ;;  %307 = vmatprep.subr.bf16.mxu1 %v479_v26 }
  0x1b   :  { %267 = vmatpush1.bf16.msra.mxu0 %v481_v27  ;;  %308 = vmatpush1.bf16.msra.mxu1 %v482_v28 }
  0x1c   :  { %268 = vmatprep.subr.bf16.mxu0 %v483_v31  ;;  %309 = vmatprep.subr.bf16.mxu1 %v485_v32 }
  0x1f   :  { %269 = vmatpush1.bf16.msra.mxu0 %v487_v34  ;;  %310 = vmatpush1.bf16.msra.mxu1 %v488_v35 }
  0x20   :  { %284 = vmatprep.subr.bf16.mxu0 %v489_v36  ;;  %325 = vmatprep.subr.bf16.mxu1 %v491_v37 }
  0x23   :  { %285 = vmatpush2.bf16.msra.mxu0 %v493_v38  ;;  %326 = vmatpush2.bf16.msra.mxu1 %v494_v39 }
  0x26   :  { %287 = vmatmul.mubr.bf16.vlgmr.msra.gmra.mxu0 %v398_v40  ;;  %328 = vmatmul.mubr.bf16.vlgmr.msra.gmra.mxu1 %v398_v40 }
  0x88   :  { %v62_v42 = vpop.permute.xlu0 %61 }
  0x8c   :  { %v370_v10 = vpop.permute.xlu1 %369 }
  0xe6   :  { %v288_v43 = vpop.f32.mrf.mxu0  ;;  %v329_v44 = vpop.f32.mrf.mxu1 }
  0xe7   :  { %v289_v47 = vadd.f32 %v288_v43, %v62_v42  ;;  %v330_v52 = vadd.f32 %v329_v44, %v62_v42 }
  0xe8   :  { %v290_v45 = vpop.f32.mrf.mxu0  ;;  %v331_v46 = vpop.f32.mrf.mxu1 }
  0xe9   :  { %v291_v48 = vadd.f32 %v290_v45, %v62_v42  ;;  %v332_v49 = vadd.f32 %v331_v46, %v62_v42 }
  0xea   :  { %v292_v50 = vpop.f32.mrf.mxu0  ;;  %v333_v51 = vpop.f32.mrf.mxu1 }
  0xeb   :  { %v336_v53 = vadd.f32 %v291_v48, %v289_v47  ;;  %v339_v57 = vsel %vm338_vm1, %v332_v49, 0.0 }
  0xec   :  { %v293_v54 = vpop.f32.mrf.mxu0  ;;  %v334_v55 = vpop.f32.mrf.mxu1 }
  0xed   :  { %v337_v56 = vadd.f32 %v336_v53, %v330_v52 }
  0xef   :  { %v340_v58 = vadd.f32 %v339_v57, %v337_v56 }
  0xf1   :  { %341 = vadd.xlane.f32.xlu0 %v340_v58 }
 0x17a   :  { %v342_v59 = vpop.xlane.xlu0 %341 }
 0x17b   :  { %v344_v60 = vmul.f32 0.0025510204, %v342_v59 }
 0x17d   :  { %v345_v61 = vsub.f32 %v289_v47, %v344_v60  ;;  %v346_v62 = vsub.f32 %v291_v48, %v344_v60  ;;  %v347_v63 = vsub.f32 %v330_v52, %v344_v60  ;;  %v348_v0 = vsub.f32 %v332_v49, %v344_v60 }
 0x17f   :  { %v349_v1 = vmul.f32 %v345_v61, %v345_v61  ;;  %v350_v2 = vmul.f32 %v346_v62, %v346_v62  ;;  %v352_v3 = vmul.f32 %v348_v0, %v348_v0  ;;  %v351_v4 = vmul.f32 %v347_v63, %v347_v63 }
 0x181   :  { %v353_v5 = vadd.f32 %v350_v2, %v349_v1  ;;  %v355_v7 = vsel %vm338_vm1, %v352_v3, 0.0 }
 0x183   :  { %v354_v6 = vadd.f32 %v353_v5, %v351_v4 }
 0x185   :  { %v356_v8 = vadd.f32 %v355_v7, %v354_v6 }
 0x187   :  { %357 = vadd.xlane.f32.xlu1 %v356_v8 }
 0x198   :  { %379 = vperm.xlu1 %440, %v376_v9  }
 0x210   :  { %v358_v11 = vpop.xlane.xlu1 %357 }
 0x211   :  { %v359_v12 = vmul.f32 0.0025510204, %v358_v11 }
 0x213   :  { %v360_v13 = vadd.f32 1e-05, %v359_v12 }
 0x214   :  { %v380_v23 = vpop.permute.xlu1 %379 }
 0x215   :  { %497 = vrsqrt.f32 %v360_v13 }
 0x222   :  { %v498_v14 = vpop.eup %497 }
 0x223   :  { %v362_v15 = vmul.f32 %v498_v14, %v345_v61  ;;  %v363_v16 = vmul.f32 %v498_v14, %v346_v62  ;;  %v364_v17 = vmul.f32 %v498_v14, %v347_v63  ;;  %v365_v18 = vmul.f32 %v498_v14, %v348_v0 }
 0x225   :  { %v372_v19 = vmul.f32 %v370_v10, %v362_v15  ;;  %v373_v20 = vmul.f32 %v370_v10, %v363_v16  ;;  %v374_v21 = vmul.f32 %v370_v10, %v364_v17  ;;  %v375_v22 = vmul.f32 %v370_v10, %v365_v18 }
 0x227   :  { %v382_v24 = vadd.f32 %v380_v23, %v372_v19  ;;  %v383_v25 = vadd.f32 %v380_v23, %v373_v20  ;;  %v384_v26 = vadd.f32 %v380_v23, %v374_v21  ;;  %v385_v27 = vadd.f32 %v380_v23, %v375_v22 }
 0x229   :  { %v386_v28 = vmax.f32 %v382_v24, 0.0  ;;  %v387_v29 = vmax.f32 %v383_v25, 0.0  ;;  %v388_v30 = vmax.f32 %v384_v26, 0.0  ;;  %v389_v31 = vmax.f32 %v385_v27, 0.0 }
 0x22b   :  { %390 = vst [vmem:[%s670_s5] sm:$0xff] %v386_v28  ;;  %391 = vst [vmem:[%s670_s5 + $0x8] sm:$0xff] %v387_v29 }
 0x22c   :  { %392 = vst [vmem:[%s670_s5 + $0x10] sm:$0xff] %v388_v30  ;;  %393 = vst.msk [vmem:[%s670_s5 + $0x18] sm:$0xff] %vm338_vm1, %v389_v31 }

// kernel: vae_forward.13
= control target key start
LH: loop header
LB: loop body
LE: loop exit
PB: predicated region body
PF: predicated region fallthrough
CT: control target
= control target key end

     0   :  { %vm392_vm0 = vcmask 1043456   ;;  %v1101_v2 = vmov 0   ;;  %vm388_vm1 = vcmask 588800   ;;  %vm1103_vm2 = vmmov 0   ;;  %s1384_s1 = inlined_call_operand.vmem [shape: bf16[72,1568], index: 1, kind: input, shape index: {}]   ;;  %s1385_s2 = inlined_call_operand.<no memory space> [shape: f32[1,1], index: 2, kind: input, shape index: {}]   ;;  %s1386_s0 = inlined_call_operand.vmem [shape: bf16[1,72], index: 0, kind: input, shape index: {}]   ;;  %s1387_s3 = inlined_call_operand.vmem [shape: f32[1,1568], index: 3, kind: output, shape index: {}]  }
   0x1   :  { %v74_v0 = vld [vmem:[%s1384_s1 + $0x1a0] sm:$0xff]  ;;  %v75_v1 = vld [vmem:[%s1384_s1 + $0x1a8] sm:$0xff]  ;;  %464 = vmatprep.mubr.bf16.mxu0 %v1101_v2  ;;  %505 = vmatprep.mubr.bf16.mxu1 %v1101_v2  ;;  %v8_v3 = vstv %s1385_s2  ;;  %v990_v8 = vld [vmem:[%s1384_s1 + $0x13c] ss:$52 sps:$4 sm:$0xff]  }
   0x2   :  { %v936_v4 = vcombine.high %v74_v0, %v74_v0  ;;  %v938_v5 = vcombine.high %v75_v1, %v75_v1  ;;  %v935_v6 = vcombine.low %v74_v0, %v74_v0  ;;  %v937_v7 = vcombine.low %v75_v1, %v75_v1  ;;  %985 = vset.pattern.permute.xlu0 %v1101_v2  ;;  %v992_v9 = vld [vmem:[%s1384_s1 + $0x144] ss:$52 sps:$4 sm:$0xff]   ;;  %v995_v13 = vld [vmem:[%s1384_s1 + $0x140] ss:$52 sps:$4 sm:$0xff]   ;;  %v998_v15 = vld [vmem:[%s1384_s1 + $0xdc] ss:$52 sps:$4 sm:$0xff]  }
   0x3   :  { %9 = vst [vmem:[#allocation2] sm:$0x1] %v8_v3  ;;  %v994_v12 = vld [vmem:[%s1384_s1 + $0x138] ss:$52 sps:$4 sm:$0xff]   ;;  %v996_v14 = vld [vmem:[%s1384_s1 + $0xd4] ss:$52 sps:$4 sm:$0xff]  }
   0x4   :  { %948 = vmatprep.subr.msk.bf16.mxu0 %vm392_vm0, %v936_v4  ;;  %950 = vmatprep.subr.msk.bf16.mxu1 %vm392_vm0, %v938_v5  ;;  %v394_v10 = vsel %vm392_vm0, %v935_v6, 0  ;;  %v400_v11 = vsel %vm392_vm0, %v937_v7, 0  ;;  %v1000_v16 = vld [vmem:[%s1384_s1 + $0xd0] ss:$52 sps:$4 sm:$0xff]   ;;  %v1001_v17 = vld [vmem:[%s1384_s1 + $0xd8] ss:$52 sps:$4 sm:$0xff]  }
   0x5   :  { %439 = vmatpush1.bf16.msra.mxu0 %v394_v10  ;;  %480 = vmatpush1.bf16.msra.mxu1 %v400_v11  ;;  %v1002_v18 = vld [vmem:[%s1384_s1 + $0x6c] ss:$52 sps:$4 sm:$0xff]   ;;  %v1004_v19 = vld [vmem:[%s1384_s1 + $0x74] ss:$52 sps:$4 sm:$0xff]   ;;  %v1007_v21 = vld [vmem:[%s1384_s1 + $0x70] ss:$52 sps:$4 sm:$0xff]  }
   0x6   :  { %440 = vmatprep.subr.bf16.mxu0 %v990_v8  ;;  %481 = vmatprep.subr.bf16.mxu1 %v992_v9  ;;  %v1006_v20 = vld [vmem:[%s1384_s1 + $0x68] ss:$52 sps:$4 sm:$0xff]   ;;  %v1008_v22 = vld [vmem:[%s1384_s1 + $0x4] ss:$52 sps:$4 sm:$0xff]   ;;  %v1010_v23 = vld [vmem:[%s1384_s1 + $0xc] ss:$52 sps:$4 sm:$0xff]  }
   0x7   :  { %v76_v24 = vld [vmem:[%s1384_s1 + $0x1b0] sm:$0xff]  ;;  %v77_v25 = vld [vmem:[%s1384_s1 + $0x1b8] sm:$0xff]  ;;  %v1198_v32 = vld [vmem:[%s1386_s0] sm:$0x1] }
   0x8   :  { %v1012_v26 = vld [vmem:[%s1384_s1] ss:$52 sps:$4 sm:$0xff]   ;;  %v1013_v27 = vld [vmem:[%s1384_s1 + $0x8] ss:$52 sps:$4 sm:$0xff]   ;;  %v940_v28 = vcombine.high %v76_v24, %v76_v24  ;;  %v942_v29 = vcombine.high %v77_v25, %v77_v25  ;;  %v939_v30 = vcombine.low %v76_v24, %v76_v24  ;;  %v941_v31 = vcombine.low %v77_v25, %v77_v25  ;;  %v1021_v38 = vld [vmem:[%s1384_s1 + $0x150] ss:$52 sps:$4 sm:$0xff]  }
   0x9   :  { %441 = vmatpush1.bf16.msra.mxu0 %v994_v12  ;;  %482 = vmatpush1.bf16.msra.mxu1 %v995_v13  ;;  %v1020_v33 = vld [vmem:[%s1384_s1 + $0x14c] ss:$52 sps:$4 sm:$0xff]   ;;  %v1023_v36 = vld [vmem:[%s1384_s1 + $0x154] ss:$52 sps:$4 sm:$0xff]   ;;  %v1026_v39 = vld [vmem:[%s1384_s1 + $0xe4] ss:$52 sps:$4 sm:$0xff]  }
   0xa   :  { %442 = vmatprep.subr.bf16.mxu0 %v996_v14  ;;  %483 = vmatprep.subr.bf16.mxu1 %v998_v15  ;;  %v406_v34 = vsel %vm392_vm0, %v939_v30, 0  ;;  %v412_v35 = vsel %vm392_vm0, %v941_v31, 0  ;;  %v1018_v37 = vld [vmem:[%s1384_s1 + $0x148] ss:$52 sps:$4 sm:$0xff]   ;;  %v1029_v40 = vld [vmem:[%s1384_s1 + $0xec] ss:$52 sps:$4 sm:$0xff]  }
   0xb   :  { %v1024_v41 = vld [vmem:[%s1384_s1 + $0xe0] ss:$52 sps:$4 sm:$0xff]   ;;  %v1027_v42 = vld [vmem:[%s1384_s1 + $0xe8] ss:$52 sps:$4 sm:$0xff]   ;;  %v1035_v44 = vld [vmem:[%s1384_s1 + $0x84] ss:$52 sps:$4 sm:$0xff]  }
   0xc   :  { %v1032_v43 = vld [vmem:[%s1384_s1 + $0x7c] ss:$52 sps:$4 sm:$0xff]   ;;  %v1030_v45 = vld [vmem:[%s1384_s1 + $0x78] ss:$52 sps:$4 sm:$0xff]   ;;  %v1033_v46 = vld [vmem:[%s1384_s1 + $0x80] ss:$52 sps:$4 sm:$0xff]  }
   0xd   :  { %443 = vmatpush1.bf16.msra.mxu0 %v1000_v16  ;;  %484 = vmatpush1.bf16.msra.mxu1 %v1001_v17  ;;  %v1038_v47 = vld [vmem:[%s1384_s1 + $0x14] ss:$52 sps:$4 sm:$0xff]   ;;  %v1041_v48 = vld [vmem:[%s1384_s1 + $0x1c] ss:$52 sps:$4 sm:$0xff]   ;;  %v78_v49 = vld [vmem:[%s1384_s1 + $0x1c0] sm:$0xff]  ;;  %v1102_v13 = vmov 0.0  }
   0xe   :  { %444 = vmatprep.subr.bf16.mxu0 %v1002_v18  ;;  %485 = vmatprep.subr.bf16.mxu1 %v1004_v19  ;;  %v79_v50 = vld [vmem:[%s1384_s1 + $0x1c8] sm:$0xff]  ;;  %v1036_v51 = vld [vmem:[%s1384_s1 + $0x10] ss:$52 sps:$4 sm:$0xff]   ;;  %v944_v53 = vcombine.high %v78_v49, %v78_v49  ;;  %v943_v55 = vcombine.low %v78_v49, %v78_v49  ;;  %v81_v57 = vld [vmem:[#allocation2] sm:$0x1]  ;;  %v87_v19 = vlaneseq }
   0xf   :  { %v1039_v52 = vld [vmem:[%s1384_s1 + $0x18] ss:$52 sps:$4 sm:$0xff]   ;;  %v946_v54 = vcombine.high %v79_v50, %v79_v50  ;;  %v945_v56 = vcombine.low %v79_v50, %v79_v50  ;;  %v1048_v60 = vld [vmem:[%s1384_s1 + $0x15c] ss:$52 sps:$4 sm:$0xff]   ;;  %84 = vperm.xlu0 %985, %v81_v57   ;;  %v1049_v63 = vld [vmem:[%s1384_s1 + $0x160] ss:$52 sps:$4 sm:$0xff]  }
  0x10   :  { %v418_v58 = vsel %vm392_vm0, %v943_v55, 0  ;;  %v1051_v61 = vld [vmem:[%s1384_s1 + $0x164] ss:$52 sps:$4 sm:$0xff]   ;;  %v1054_v0 = vld [vmem:[%s1384_s1 + $0xf4] ss:$52 sps:$4 sm:$0xff]   ;;  %vm876_vm3 = vcmp.lt.s32.totalorder %v87_v19, 544 }
  0x11   :  { %445 = vmatpush1.bf16.msra.mxu0 %v1006_v20  ;;  %486 = vmatpush1.bf16.msra.mxu1 %v1007_v21  ;;  %v424_v59 = vsel %vm392_vm0, %v945_v56, 0  ;;  %v1046_v62 = vld [vmem:[%s1384_s1 + $0x158] ss:$52 sps:$4 sm:$0xff]   ;;  %v1057_v1 = vld [vmem:[%s1384_s1 + $0xfc] ss:$52 sps:$4 sm:$0xff]   ;;  %v1345_v20 = vshrl.u32 %v87_v19, 7 }
  0x12   :  { %446 = vmatprep.subr.bf16.mxu0 %v1008_v22  ;;  %487 = vmatprep.subr.bf16.mxu1 %v1010_v23  ;;  %v1052_v3 = vld [vmem:[%s1384_s1 + $0xf0] ss:$52 sps:$4 sm:$0xff]   ;;  %v1055_v4 = vld [vmem:[%s1384_s1 + $0xf8] ss:$52 sps:$4 sm:$0xff]   ;;  %v1058_v6 = vld [vmem:[%s1384_s1 + $0x88] ss:$52 sps:$4 sm:$0xff]  }
  0x13   :  { %v1060_v5 = vld [vmem:[%s1384_s1 + $0x8c] ss:$52 sps:$4 sm:$0xff]   ;;  %v1061_v7 = vld [vmem:[%s1384_s1 + $0x90] ss:$52 sps:$4 sm:$0xff]   ;;  %v1067_v11 = vld [vmem:[%s1384_s1 + $0x28] ss:$52 sps:$4 sm:$0xff]  }
  0x14   :  { %v1066_v8 = vld [vmem:[%s1384_s1 + $0x24] ss:$52 sps:$4 sm:$0xff]   ;;  %v1069_v9 = vld [vmem:[%s1384_s1 + $0x2c] ss:$52 sps:$4 sm:$0xff]   ;;  %v1070_v12 = vld [vmem:[%s1384_s1 + $0x1d0] ss:$0 sps:$4 sm:$0xff]  }
  0x15   :  { %447 = vmatpush1.bf16.msra.mxu0 %v1012_v26  ;;  %488 = vmatpush1.bf16.msra.mxu1 %v1013_v27  ;;  %v1064_v10 = vld [vmem:[%s1384_s1 + $0x20] ss:$52 sps:$4 sm:$0xff]   ;;  %v430_v14 = vsel %vm392_vm0, %v1070_v12, 0  ;;  %v1071_v15 = vld [vmem:[%s1384_s1 + $0x168] ss:$52 sps:$4 sm:$0xff]   ;;  %v89_v21 = vsub.s32 0, %v1345_v20 }
  0x16   :  { %952 = vmatprep.subr.msk.bf16.mxu0 %vm392_vm0, %v940_v28  ;;  %954 = vmatprep.subr.msk.bf16.mxu1 %vm392_vm0, %v942_v29  ;;  %v1072_v16 = vld [vmem:[%s1384_s1 + $0x100] ss:$52 sps:$4 sm:$0xff]   ;;  %v1073_v17 = vld [vmem:[%s1384_s1 + $0x98] ss:$52 sps:$4 sm:$0xff]   ;;  %v1074_v18 = vld [vmem:[%s1384_s1 + $0x30] ss:$52 sps:$4 sm:$0xff]  }
  0x18   :  { %949 = vmatmul.mubr.msk.bf16.vlgmr.msra.gmra.mxu0 %vm388_vm1, %v1198_v32  ;;  %951 = vmatmul.mubr.msk.bf16.vlgmr.msra.gmra.mxu1 %vm388_vm1, %v1198_v32 }
  0x19   :  { %521 = vmatpush1.bf16.msra.mxu0 %v406_v34  ;;  %562 = vmatpush1.bf16.msra.mxu1 %v412_v35 }
  0x1a   :  { %522 = vmatprep.subr.bf16.mxu0 %v1020_v33  ;;  %563 = vmatprep.subr.bf16.mxu1 %v1023_v36 }
  0x1b   :  { %546 = vmatprep.mubr.bf16.mxu0 %v1101_v2  ;;  %587 = vmatprep.mubr.bf16.mxu1 %v1101_v2 }
  0x1d   :  { %523 = vmatpush1.bf16.msra.mxu0 %v1018_v37  ;;  %564 = vmatpush1.bf16.msra.mxu1 %v1021_v38 }
  0x1e   :  { %524 = vmatprep.subr.bf16.mxu0 %v1026_v39  ;;  %565 = vmatprep.subr.bf16.mxu1 %v1029_v40 }
  0x21   :  { %525 = vmatpush1.bf16.msra.mxu0 %v1024_v41  ;;  %566 = vmatpush1.bf16.msra.mxu1 %v1027_v42 }
  0x22   :  { %526 = vmatprep.subr.bf16.mxu0 %v1032_v43  ;;  %567 = vmatprep.subr.bf16.mxu1 %v1035_v44 }
  0x25   :  { %527 = vmatpush1.bf16.msra.mxu0 %v1030_v45  ;;  %568 = vmatpush1.bf16.msra.mxu1 %v1033_v46 }
  0x26   :  { %528 = vmatprep.subr.bf16.mxu0 %v1038_v47  ;;  %569 = vmatprep.subr.bf16.mxu1 %v1041_v48 }
  0x29   :  { %529 = vmatpush1.bf16.msra.mxu0 %v1036_v51  ;;  %570 = vmatpush1.bf16.msra.mxu1 %v1039_v52 }
  0x2a   :  { %956 = vmatprep.subr.msk.bf16.mxu0 %vm392_vm0, %v944_v53  ;;  %958 = vmatprep.subr.msk.bf16.mxu1 %vm392_vm0, %v946_v54 }
  0x2c   :  { %953 = vmatmul.mubr.msk.bf16.vlgmr.msra.gmra.mxu0 %vm388_vm1, %v1198_v32  ;;  %955 = vmatmul.mubr.msk.bf16.vlgmr.msra.gmra.mxu1 %vm388_vm1, %v1198_v32 }
  0x2d   :  { %603 = vmatpush1.bf16.msra.mxu0 %v418_v58  ;;  %644 = vmatpush1.bf16.msra.mxu1 %v424_v59 }
  0x2e   :  { %604 = vmatprep.subr.bf16.mxu0 %v1048_v60  ;;  %645 = vmatprep.subr.bf16.mxu1 %v1051_v61  ;;  %v1104_v60 = vmov 1966171168  }
  0x2f   :  { %628 = vmatprep.mubr.bf16.mxu0 %v1101_v2  ;;  %669 = vmatprep.mubr.bf16.mxu1 %v1101_v2  ;;  %v1063_v2 = vld [vmem:[%s1384_s1 + $0x94] ss:$52 sps:$4 sm:$0xff]   ;;  %v788_v61 = vunpack.c.l.s4 %v1104_v60 }
  0x31   :  { %605 = vmatpush1.bf16.msra.mxu0 %v1046_v62  ;;  %646 = vmatpush1.bf16.msra.mxu1 %v1049_v63 }
  0x32   :  { %606 = vmatprep.subr.bf16.mxu0 %v1054_v0  ;;  %647 = vmatprep.subr.bf16.mxu1 %v1057_v1 }
  0x35   :  { %607 = vmatpush1.bf16.msra.mxu0 %v1052_v3  ;;  %648 = vmatpush1.bf16.msra.mxu1 %v1055_v4  ;;  %v789_v3 = vunpack.c.0.s8 %v788_v61 }
  0x36   :  { %608 = vmatprep.subr.bf16.mxu0 %v1060_v5  ;;  %649 = vmatprep.subr.bf16.mxu1 %v1063_v2 }
  0x39   :  { %609 = vmatpush1.bf16.msra.mxu0 %v1058_v6  ;;  %650 = vmatpush1.bf16.msra.mxu1 %v1061_v7 }
  0x3a   :  { %610 = vmatprep.subr.bf16.mxu0 %v1066_v8  ;;  %651 = vmatprep.subr.bf16.mxu1 %v1069_v9 }
  0x3d   :  { %611 = vmatpush1.bf16.msra.mxu0 %v1064_v10  ;;  %652 = vmatpush1.bf16.msra.mxu1 %v1067_v11  ;;  %v1359_v11 = vsub.s32 %v789_v3, %v1345_v20 }
  0x3e   :  { %967 = vmatprep.subr.bf16.mxu0 %v1102_v13 }
  0x40   :  { %957 = vmatmul.mubr.msk.bf16.vlgmr.msra.gmra.mxu0 %vm388_vm1, %v1198_v32  ;;  %959 = vmatmul.mubr.msk.bf16.vlgmr.msra.gmra.mxu1 %vm388_vm1, %v1198_v32 }
  0x41   :  { %968 = vmatpush3.bf16.msra.mxu0 %v430_v14  ;;  %977 = vmatprep.mubr.msk.bf16.mxu0 %vm1103_vm2, %v1102_v13 }
  0x42   :  { %969 = vmatprep.subr.bf16.mxu0 %v1102_v13 }
  0x45   :  { %970 = vmatpush3.bf16.msra.mxu0 %v1071_v15 }
  0x46   :  { %971 = vmatprep.subr.bf16.mxu0 %v1102_v13 }
  0x49   :  { %972 = vmatpush3.bf16.msra.mxu0 %v1072_v16 }
  0x4a   :  { %973 = vmatprep.subr.bf16.mxu0 %v1102_v13 }
  0x4d   :  { %974 = vmatpush3.bf16.msra.mxu0 %v1073_v17 }
  0x4e   :  { %975 = vmatprep.subr.bf16.mxu0 %v1102_v13 }
  0x51   :  { %976 = vmatpush3.bf16.msra.mxu0 %v1074_v18 }
  0x54   :  { %978 = vmatmul.mubr.msk.bf16.vlgmr.msra.gmra.mxu0 %vm388_vm1, %v1198_v32 }
  0x8a   :  { %v85_v22 = vpop.permute.xlu0 %84 }
  0x8b   :  { %v1348_v25 = vrot.slane %v85_v22, %v89_v21 }
  0xd8   :  { %v466_v23 = vpop.f32.mrf.mxu0  ;;  %v507_v24 = vpop.f32.mrf.mxu1 }
  0xd9   :  { %v467_v30 = vadd.f32 %v466_v23, %v1348_v25  ;;  %v508_v31 = vadd.f32 %v507_v24, %v1348_v25 }
  0xda   :  { %v468_v26 = vpop.f32.mrf.mxu0  ;;  %v509_v27 = vpop.f32.mrf.mxu1 }
  0xdb   :  { %v469_v34 = vadd.f32 %v468_v26, %v1348_v25  ;;  %v510_v35 = vadd.f32 %v509_v27, %v1348_v25  ;;  %v718_v36 = vmul.f32 0.5, %v467_v30  ;;  %v720_v37 = vmul.f32 0.5, %v508_v31 }
  0xdc   :  { %v470_v28 = vpop.f32.mrf.mxu0  ;;  %v511_v29 = vpop.f32.mrf.mxu1 }
  0xdd   :  { %v719_v38 = vmul.f32 0.5, %v469_v34  ;;  %v721_v39 = vmul.f32 0.5, %v510_v35  ;;  %1075 = vtanh.f32 %v718_v36 }
  0xde   :  { %v471_v32 = vpop.f32.mrf.mxu0  ;;  %v512_v33 = vpop.f32.mrf.mxu1  ;;  %1077 = vtanh.f32 %v720_v37 }
  0xdf   :  { %1079 = vtanh.f32 %v719_v38 }
  0xe0   :  { %1081 = vtanh.f32 %v721_v39 }
  0xea   :  { %v1076_v53 = vpop.eup %1075 }
  0xeb   :  { %v1078_v57 = vpop.eup %1077  ;;  %v744_v62 = vadd.f32 1.0, %v1076_v53 }
  0xec   :  { %v548_v40 = vpop.f32.mrf.mxu0  ;;  %v589_v41 = vpop.f32.mrf.mxu1  ;;  %v746_v63 = vadd.f32 1.0, %v1078_v57 }
  0xed   :  { %v549_v42 = vadd.f32 %v548_v40, %v1348_v25  ;;  %v590_v43 = vadd.f32 %v589_v41, %v1348_v25  ;;  %v1080_v58 = vpop.eup %1079  ;;  %v757_v4 = vmul.f32 0.5, %v744_v62 }
  0xee   :  { %v550_v44 = vpop.f32.mrf.mxu0  ;;  %v591_v45 = vpop.f32.mrf.mxu1  ;;  %v745_v0 = vadd.f32 1.0, %v1080_v58  ;;  %v759_v5 = vmul.f32 0.5, %v746_v63 }
  0xef   :  { %v722_v46 = vmul.f32 0.5, %v549_v42  ;;  %v724_v47 = vmul.f32 0.5, %v590_v43  ;;  %v551_v48 = vadd.f32 %v550_v44, %v1348_v25  ;;  %v592_v49 = vadd.f32 %v591_v45, %v1348_v25  ;;  %v1082_v59 = vpop.eup %1081 }
  0xf0   :  { %v552_v50 = vpop.f32.mrf.mxu0  ;;  %v593_v51 = vpop.f32.mrf.mxu1  ;;  %v747_v1 = vadd.f32 1.0, %v1082_v59  ;;  %v758_v2 = vmul.f32 0.5, %v745_v0 }
  0xf1   :  { %1083 = vtanh.f32 %v722_v46  ;;  %v723_v52 = vmul.f32 0.5, %v551_v48  ;;  %v725_v54 = vmul.f32 0.5, %v592_v49 }
  0xf2   :  { %1085 = vtanh.f32 %v724_v47  ;;  %v553_v55 = vpop.f32.mrf.mxu0  ;;  %v594_v56 = vpop.f32.mrf.mxu1  ;;  %v760_v6 = vmul.f32 0.5, %v747_v1  ;;  %v783_v12 = vcombine.low %v757_v4, %v758_v2 }
  0xf3   :  { %1087 = vtanh.f32 %v723_v52 }
  0xf4   :  { %1089 = vtanh.f32 %v725_v54  ;;  %v784_v13 = vcombine.low %v759_v5, %v760_v6  ;;  %v793_v32 = vrot.slane %v783_v12, %v1359_v11 }
  0xf6   :  { %v800_v33 = vrot.slane %v784_v13, %v1359_v11 }
  0xf8   :  { %v815_v45 = vcombine.low %v793_v32, %v800_v33 }
  0xfa   :  { %v823_v48 = vrot.slane %v815_v45, %v1359_v11 }
  0xfe   :  { %v1084_v7 = vpop.eup %1083 }
  0xff   :  { %v1086_v8 = vpop.eup %1085  ;;  %v748_v9 = vadd.f32 1.0, %v1084_v7 }
 0x100   :  { %v1088_v10 = vpop.eup %1087  ;;  %v750_v14 = vadd.f32 1.0, %v1086_v8  ;;  %v630_v15 = vpop.f32.mrf.mxu0 }
 0x101   :  { %v671_v16 = vpop.f32.mrf.mxu1  ;;  %v1090_v17 = vpop.eup %1089  ;;  %v761_v18 = vmul.f32 0.5, %v748_v9  ;;  %v749_v21 = vadd.f32 1.0, %v1088_v10  ;;  %v631_v22 = vadd.f32 %v630_v15, %v1348_v25 }
 0x102   :  { %v672_v23 = vadd.f32 %v671_v16, %v1348_v25  ;;  %v763_v24 = vmul.f32 0.5, %v750_v14  ;;  %v751_v26 = vadd.f32 1.0, %v1090_v17  ;;  %v632_v27 = vpop.f32.mrf.mxu0 }
 0x103   :  { %v673_v28 = vpop.f32.mrf.mxu1  ;;  %v762_v29 = vmul.f32 0.5, %v749_v21  ;;  %v726_v30 = vmul.f32 0.5, %v631_v22  ;;  %v633_v31 = vadd.f32 %v632_v27, %v1348_v25 }
 0x104   :  { %v728_v20 = vmul.f32 0.5, %v672_v23  ;;  %v764_v34 = vmul.f32 0.5, %v751_v26  ;;  %v674_v35 = vadd.f32 %v673_v28, %v1348_v25  ;;  %v634_v36 = vpop.f32.mrf.mxu0 }
 0x105   :  { %v675_v37 = vpop.f32.mrf.mxu1  ;;  %v785_v38 = vcombine.low %v761_v18, %v762_v29  ;;  %v727_v39 = vmul.f32 0.5, %v633_v31  ;;  %1091 = vtanh.f32 %v726_v30 }
 0x106   :  { %v786_v40 = vcombine.low %v763_v24, %v764_v34  ;;  %v729_v41 = vmul.f32 0.5, %v674_v35  ;;  %v635_v42 = vpop.f32.mrf.mxu0  ;;  %1093 = vtanh.f32 %v728_v20 }
 0x107   :  { %v676_v43 = vpop.f32.mrf.mxu1  ;;  %v807_v44 = vrot.slane %v785_v38, %v1359_v11  ;;  %1095 = vtanh.f32 %v727_v39 }
 0x108   :  { %v814_v46 = vrot.slane %v786_v40, %v1359_v11  ;;  %1097 = vtanh.f32 %v729_v41 }
 0x10a   :  { %v816_v47 = vcombine.low %v807_v44, %v814_v46 }
 0x10c   :  { %v830_v49 = vrot.slane %v816_v47, %v1359_v11 }
 0x10e   :  { %v831_v50 = vcombine.low %v823_v48, %v830_v49 }
 0x110   :  { %873 = vst [vmem:[%s1387_s3] sm:$0xff] %v831_v50 }
 0x112   :  { %v1092_v51 = vpop.eup %1091 }
 0x113   :  { %v1094_v52 = vpop.eup %1093  ;;  %v752_v59 = vadd.f32 1.0, %v1092_v51 }
 0x114   :  { %v712_v53 = vpop.f32.mrf.mxu0  ;;  %v1096_v54 = vpop.eup %1095  ;;  %v754_v61 = vadd.f32 1.0, %v1094_v52 }
 0x115   :  { %v713_v55 = vadd.f32 %v712_v53, %v1348_v25  ;;  %v1098_v56 = vpop.eup %1097  ;;  %v753_v62 = vadd.f32 1.0, %v1096_v54  ;;  %v765_v1 = vmul.f32 0.5, %v752_v59 }
 0x116   :  { %v979_v57 = vpop.f32.mrf.mxu0  ;;  %v755_v63 = vadd.f32 1.0, %v1098_v56  ;;  %v767_v3 = vmul.f32 0.5, %v754_v61 }
 0x117   :  { %v730_v58 = vmul.f32 0.5, %v713_v55  ;;  %v766_v4 = vmul.f32 0.5, %v753_v62 }
 0x118   :  { %v715_v60 = vpop.f32.mrf.mxu0  ;;  %v768_v5 = vmul.f32 0.5, %v755_v63 }
 0x119   :  { %1099 = vtanh.f32 %v730_v58  ;;  %v832_v2 = vcombine.low %v765_v1, %v766_v4 }
 0x11a   :  { %v980_v0 = vpop.f32.mrf.mxu0  ;;  %v833_v6 = vcombine.low %v767_v3, %v768_v5 }
 0x11b   :  { %v840_v7 = vrot.slane %v832_v2, %v1359_v11 }
 0x11c   :  { %v847_v25 = vrot.slane %v833_v6, %v1359_v11 }
 0x11e   :  { %v855_v10 = vcombine.low %v840_v7, %v847_v25 }
 0x120   :  { %v862_v14 = vrot.slane %v855_v10, %v1359_v11 }
 0x126   :  { %v1100_v8 = vpop.eup %1099 }
 0x127   :  { %v756_v9 = vadd.f32 1.0, %v1100_v8 }
 0x129   :  { %v769_v12 = vmul.f32 0.5, %v756_v9 }
 0x12b   :  { %v854_v13 = vrot.slane %v769_v12, %v1359_v11 }
 0x12d   :  { %v869_v15 = vrot.slane %v854_v13, %v1359_v11 }
 0x12f   :  { %v870_v16 = vcombine.low %v862_v14, %v869_v15 }
 0x131   :  { %878 = vst.msk [vmem:[%s1387_s3 + $0x8] sm:$0x1f] %vm876_vm3, %v870_v16 }

</bundles_post_ra>
